<compile_context>
chip_gen: v7x
topology: tpu7x:2x2x1
jax: 0.10.0
libtpu: 0.0.40
codegen_flags: <defaults>
</compile_context>

<pallas_src>
import functools

import jax
import jax.numpy as jnp
from jax.experimental import pallas as pl
from jax.experimental.pallas import tpu as pltpu

LEAKY_SLOPE = 0.01            # torch.nn.LeakyReLU default negative_slope
TILE = 256                    # row/col tile (multiple of 128; MXU aligned on v6e/v7x)
VMEM_LIMIT = 32 * 1024 * 1024  # explicit scoped-VMEM limit (fits v5e/v6e/v7x)


# --------------------------------------------------------------------------
# Hop propagation kernel:  Y = A @ X   (tiled, bf16 in, f32 accumulate)
# --------------------------------------------------------------------------
def _hop_kernel(a_ref, x_ref, o_ref, acc_ref):
    @pl.when(pl.program_id(1) == 0)
    def _():
        acc_ref[...] = jnp.zeros_like(acc_ref)

    acc_ref[...] += jnp.dot(a_ref[...], x_ref[...],
                            preferred_element_type=jnp.float32)

    @pl.when(pl.program_id(1) == pl.num_programs(1) - 1)
    def _():
        o_ref[...] = acc_ref[...].astype(o_ref.dtype)


def _hop_matmul(A_p, x_p, *, tile=TILE):
    Np = A_p.shape[0]
    Cx = x_p.shape[1]
    grid = (Np // tile, Np // tile)
    return pl.pallas_call(
        _hop_kernel,
        out_shape=jax.ShapeDtypeStruct((Np, Cx), jnp.bfloat16),
        grid_spec=pltpu.PrefetchScalarGridSpec(
            num_scalar_prefetch=0,
            grid=grid,
            in_specs=[pl.BlockSpec((tile, tile), lambda i, k: (i, k)),
                      pl.BlockSpec((tile, Cx), lambda i, k: (k, 0))],
            out_specs=pl.BlockSpec((tile, Cx), lambda i, k: (i, 0)),
            scratch_shapes=[pltpu.VMEM((tile, Cx), jnp.float32)]),
        compiler_params=pltpu.CompilerParams(
            dimension_semantics=("parallel", "arbitrary"),
            vmem_limit_bytes=VMEM_LIMIT),
    )(A_p, x_p)


# --------------------------------------------------------------------------
# Fused TAG layer kernel: one packed-lane weight matmul for all K+1 hops,
# bias + LeakyReLU, optionally the regression head (last layer).
# --------------------------------------------------------------------------
def _tag_layer_kernel(*refs, apply_head):
    if apply_head:
        z_ref, wcat_ref, b_ref, w3_ref, b3_ref, o_ref = refs
    else:
        z_ref, wcat_ref, b_ref, o_ref = refs

    # sum_k (A^k h) W_k  ==  Z_packed @ W_cat   (single MXU pass per layer)
    h = jnp.dot(z_ref[...], wcat_ref[...],
                preferred_element_type=jnp.float32) + b_ref[...]
    h = jnp.where(h > 0, h, LEAKY_SLOPE * h)          # LeakyReLU, f32 on VPU

    if apply_head:                                    # singleLinear(H -> T)
        o_ref[...] = (jnp.dot(h.astype(w3_ref.dtype), w3_ref[...],
                              preferred_element_type=jnp.float32)
                      + b3_ref[...]).astype(o_ref.dtype)
    else:
        o_ref[...] = h.astype(o_ref.dtype)


def _tag_layer_call(z, wcat, b, w3=None, b3=None, *, apply_head, tile=TILE):
    Np, Cp = z.shape
    Hp = wcat.shape[1]
    grid = (Np // tile,)

    in_specs = [pl.BlockSpec((tile, Cp), lambda i: (i, 0)),
                pl.BlockSpec((Cp, Hp), lambda i: (0, 0)),
                pl.BlockSpec((1, Hp), lambda i: (0, 0))]
    args = [z, wcat, b]
    if apply_head:
        Tp = w3.shape[1]
        in_specs += [pl.BlockSpec((Hp, Tp), lambda i: (0, 0)),
                     pl.BlockSpec((1, Tp), lambda i: (0, 0))]
        args += [w3, b3]
        out_lanes, out_dtype = Tp, jnp.float32
    else:
        out_lanes, out_dtype = Hp, jnp.bfloat16

    kernel = functools.partial(_tag_layer_kernel, apply_head=apply_head)
    return pl.pallas_call(
        kernel,
        out_shape=jax.ShapeDtypeStruct((Np, out_lanes), out_dtype),
        grid_spec=pltpu.PrefetchScalarGridSpec(
            num_scalar_prefetch=0,
            grid=grid,
            in_specs=in_specs,
            out_specs=pl.BlockSpec((tile, out_lanes), lambda i: (i, 0))),
        compiler_params=pltpu.CompilerParams(
            dimension_semantics=("parallel",),
            vmem_limit_bytes=VMEM_LIMIT),
    )(*args)


# --------------------------------------------------------------------------
# Plain-JAX glue: adjacency normalization, padding, weight packing
# --------------------------------------------------------------------------
def _round_up(n, m):
    return ((n + m - 1) // m) * m


def _pad_to(a, shape):
    pads = [(0, s - d) for s, d in zip(shape, a.shape)]
    return jnp.pad(a, pads)


def gcn_norm_dense(edge_index, edge_weight, num_nodes):
    """Dense GCN-normalized adjacency (no self-loops), matching PyG TAGConv."""
    row, col = edge_index[0], edge_index[1]            # row = source, col = target
    deg = jnp.zeros((num_nodes,), jnp.float32).at[col].add(edge_weight)
    dinv = jnp.where(deg > 0, jax.lax.rsqrt(deg), 0.0)
    norm = dinv[row] * edge_weight * dinv[col]
    # out[i] = sum over edges (j -> i) of norm * x[j]  ==>  A[i, j] += norm
    A = jnp.zeros((num_nodes, num_nodes), jnp.float32).at[col, row].add(norm)
    return A
    # TODO(synk): for large sparse graphs, a block-sparse / scalar-prefetch
    # formulation that skips all-zero A tiles would replace this dense A.


def _pack_weight(W, hin, H, Hp):
    """(K+1, hin, H) -> lane-packed ((K+1)*hin rounded to 128, Hp) bf16."""
    kp1 = W.shape[0]
    Cp = _round_up(kp1 * hin, 128)
    Wc = W.reshape(kp1 * hin, H)                       # row order: (k, feature)
    return _pad_to(Wc, (Cp, Hp)).astype(jnp.bfloat16), Cp


def tag_node_reg_forward(x, edge_index, edge_attr, params, *, K, num_layers,
                         tile=TILE):
    N, F_in = x.shape
    H = params["w1"].shape[-1]
    T = params["w3"].shape[-1]

    edge_weight = edge_attr[:, 6].astype(jnp.float32)  # forward uses edge_attr[:, 6]
    A = gcn_norm_dense(edge_index.astype(jnp.int32), edge_weight, N)

    # Pad to MXU / lane friendly sizes. Zero padding is exact: padded rows of A
    # are zero, padded columns of A never mix into real rows, and the final
    # result is sliced back to (N, T).
    Np = _round_up(N, tile)
    Fp = _round_up(F_in, 128)
    Hp = _round_up(H, 128)
    Tp = _round_up(T, 128)

    A_p = _pad_to(A, (Np, Np)).astype(jnp.bfloat16)
    h = _pad_to(x.astype(jnp.float32), (Np, Fp)).astype(jnp.bfloat16)

    w3 = _pad_to(params["w3"], (Hp, Tp)).astype(jnp.bfloat16)
    b3 = _pad_to(params["b3"].reshape(1, -1), (1, Tp))

    out = None
    for layer in range(num_layers):
        hin = F_in if layer == 0 else H
        if layer == 0:
            wcat, Cp = _pack_weight(params["w1"], hin, H, Hp)
            b = _pad_to(params["b1"].reshape(1, -1), (1, Hp))
        else:
            wcat, Cp = _pack_weight(params["w2"][layer - 1], hin, H, Hp)
            b = _pad_to(params["b2"][layer - 1].reshape(1, -1), (1, Hp))

        # K propagation hops: tiled MXU matmuls on the padded dense adjacency.
        hops = [h]
        for _ in range(K):
            hops.append(_hop_matmul(A_p, hops[-1], tile=tile))

        # Lane-pack the K+1 hop results into [Np, Cp] (cheap XLA glue; the
        # fused (K+1)-hop weight matmul itself runs inside the Pallas kernel).
        z = jnp.concatenate([hk[:, :hin] for hk in hops], axis=1)
        z = _pad_to(z, (Np, Cp)).astype(jnp.bfloat16)

        if layer == num_layers - 1:
            # reghead_layers == 1 -> fuse singleLinear into the last layer call.
            out = _tag_layer_call(z, wcat, b, w3, b3, apply_head=True, tile=tile)
        else:
            h = _tag_layer_call(z, wcat, b, apply_head=False, tile=tile)

    return out[:N, :T]


# --------------------------------------------------------------------------
# Parameters + pure-JAX reference
# --------------------------------------------------------------------------
def init_params(key, num_node_features, hidden_size, num_layers, K, num_targets):
    ks = iter(jax.random.split(key, 8))
    return {
        "w1": 0.1 * jax.random.normal(next(ks), (K + 1, num_node_features, hidden_size), jnp.float32),
        "b1": 0.1 * jax.random.normal(next(ks), (hidden_size,), jnp.float32),
        "w2": 0.1 * jax.random.normal(next(ks), (num_layers - 1, K + 1, hidden_size, hidden_size), jnp.float32),
        "b2": 0.1 * jax.random.normal(next(ks), (num_layers - 1, hidden_size), jnp.float32),
        "w3": 0.1 * jax.random.normal(next(ks), (hidden_size, num_targets), jnp.float32),
        "b3": 0.1 * jax.random.normal(next(ks), (num_targets,), jnp.float32),
    }


def _leaky(x):
    return jnp.where(x > 0, x, LEAKY_SLOPE * x)


def ref_forward(x, edge_index, edge_attr, params, *, K, num_layers):
    """Pure-JAX f32 reference of the eval-mode PyTorch forward."""
    N = x.shape[0]
    A = gcn_norm_dense(edge_index.astype(jnp.int32),
                       edge_attr[:, 6].astype(jnp.float32), N)

    def tag(xh, W, b):
        out = xh @ W[0]
        xk = xh
        for k in range(1, K + 1):
            xk = A @ xk
            out = out + xk @ W[k]
        return out + b

    h = _leaky(tag(x.astype(jnp.float32), params["w1"], params["b1"]))
    for layer in range(num_layers - 1):
        h = _leaky(tag(h, params["w2"][layer], params["b2"][layer]))
    return h @ params["w3"] + params["b3"]


if __name__ == "__main__":
    # Module defaults: num_node_features=2, num_targets=1, hidden=16, layers=3,
    # K=4, reghead_layers=1, no batchnorm, no skipcon, dropout inactive (eval).
    NUM_NODE_FEATURES, NUM_TARGETS = 2, 1
    HIDDEN, NUM_LAYERS, K = 16, 3, 4
    N_NODES, N_EDGES = 16, 40

    key = jax.random.PRNGKey(0)
    k_x, k_src, k_dst, k_attr, k_par = jax.random.split(key, 5)

    x = jax.random.normal(k_x, (N_NODES, NUM_NODE_FEATURES), jnp.float32)
    src = jax.random.randint(k_src, (N_EDGES,), 0, N_NODES)
    dst = jax.random.randint(k_dst, (N_EDGES,), 0, N_NODES)
    edge_index = jnp.stack([src, dst]).astype(jnp.int32)
    # positive edge weights so deg^-0.5 is well defined (column 6 is used)
    edge_attr = jax.random.uniform(k_attr, (N_EDGES, 8), jnp.float32, 0.5, 1.5)

    params = init_params(k_par, NUM_NODE_FEATURES, HIDDEN, NUM_LAYERS, K, NUM_TARGETS)

    fwd = jax.jit(functools.partial(tag_node_reg_forward, K=K, num_layers=NUM_LAYERS))
    out = jax.block_until_ready(fwd(x, edge_index, edge_attr, params))

    ref = jax.block_until_ready(
        ref_forward(x, edge_index, edge_attr, params, K=K, num_layers=NUM_LAYERS))

    assert out.shape == (N_NODES, NUM_TARGETS), out.shape
    # bf16 MXU inputs (f32 accumulation) -> compare against f32 ref with
    # loosened tolerance, as recommended in the performance review.
    assert jnp.allclose(out, ref, rtol=5e-2, atol=3e-2), (out, ref)
    # TODO(synk): Dropout / BatchNorm are inference-mode identities here
    # (module defaults use_batchnorm=False, eval-mode dropout); training-mode
    # stochastic dropout and the reghead_layers>1 path are not implemented.
    print("KERNEL_OK")
</pallas_src>

<mosaic_0001>
module attributes {stable_mosaic.version = 11 : i64} {
  func.func @_hop_kernel(%arg0: i32, %arg1: i32, %arg2: memref<256x256xbf16, #tpu.memory_space<vmem>>, %arg3: memref<256x128xbf16, #tpu.memory_space<vmem>>, %arg4: memref<256x128xbf16, #tpu.memory_space<vmem>>, %arg5: memref<256x128xf32, #tpu.memory_space<vmem>>) attributes {dimension_semantics = [#tpu.dimension_semantics<parallel>, #tpu.dimension_semantics<arbitrary>], iteration_bounds = array<i64: 1, 1>, scalar_prefetch = 0 : i64, scratch_operands = 1 : i64, tpu.core_type = #tpu.core_type<tc>, window_params = [{transform_indices = @transform_0, window_bounds = array<i64: 256, 256>}, {transform_indices = @transform_1, window_bounds = array<i64: 256, 128>}, {transform_indices = @transform_2, window_bounds = array<i64: 256, 128>}]} {
    %c0_i32 = arith.constant 0 : i32
    %0 = arith.cmpi eq, %arg1, %c0_i32 : i32
    %1 = arith.extui %0 : i1 to i32
    %c0_i32_0 = arith.constant 0 : i32
    %2 = arith.cmpi ne, %1, %c0_i32_0 : i32
    scf.if %2 {
      %cst_10 = arith.constant 0.000000e+00 : f32
      %12 = vector.broadcast %cst_10 : f32 to vector<256x128xf32>
      %c0_11 = arith.constant 0 : index
      %c0_12 = arith.constant 0 : index
      %13 = vector.load %arg5[%c0_11, %c0_12] : memref<256x128xf32, #tpu.memory_space<vmem>>, vector<256x128xf32>
      tpu.vector_store %arg5[%c0_11, %c0_12], %12 {strides = array<i32>} : memref<256x128xf32, #tpu.memory_space<vmem>>, vector<256x128xf32>,
    } else {
    }
    %c0 = arith.constant 0 : index
    %c0_1 = arith.constant 0 : index
    %3 = vector.load %arg5[%c0, %c0_1] : memref<256x128xf32, #tpu.memory_space<vmem>>, vector<256x128xf32>
    %c0_2 = arith.constant 0 : index
    %c0_3 = arith.constant 0 : index
    %4 = vector.load %arg2[%c0_2, %c0_3] : memref<256x256xbf16, #tpu.memory_space<vmem>>, vector<256x256xbf16>
    %c0_4 = arith.constant 0 : index
    %c0_5 = arith.constant 0 : index
    %5 = vector.load %arg3[%c0_4, %c0_5] : memref<256x128xbf16, #tpu.memory_space<vmem>>, vector<256x128xbf16>
    %cst = arith.constant dense<0.000000e+00> : vector<256x128xf32>
    %6 = tpu.matmul %4, %5, %cst {dimension_numbers = #tpu.dot_dimension_numbers<[1], [0], [0], [1], [0, 0, 1, 1], [], []>} : vector<256x256xbf16>, vector<256x128xbf16>, vector<256x128xf32> -> vector<256x128xf32>
    %7 = arith.addf %3, %6 : vector<256x128xf32>
    %c0_6 = arith.constant 0 : index
    %c0_7 = arith.constant 0 : index
    %8 = vector.load %arg5[%c0_6, %c0_7] : memref<256x128xf32, #tpu.memory_space<vmem>>, vector<256x128xf32>
    tpu.vector_store %arg5[%c0_6, %c0_7], %7 {strides = array<i32>} : memref<256x128xf32, #tpu.memory_space<vmem>>, vector<256x128xf32>,
    %c0_i32_8 = arith.constant 0 : i32
    %9 = arith.cmpi eq, %arg1, %c0_i32_8 : i32
    %10 = arith.extui %9 : i1 to i32
    %c0_i32_9 = arith.constant 0 : i32
    %11 = arith.cmpi ne, %10, %c0_i32_9 : i32
    scf.if %11 {
      %c0_10 = arith.constant 0 : index
      %c0_11 = arith.constant 0 : index
      %12 = vector.load %arg5[%c0_10, %c0_11] : memref<256x128xf32, #tpu.memory_space<vmem>>, vector<256x128xf32>
      %13 = arith.truncf %12 : vector<256x128xf32> to vector<256x128xbf16>
      %c0_12 = arith.constant 0 : index
      %c0_13 = arith.constant 0 : index
      %14 = vector.load %arg4[%c0_12, %c0_13] : memref<256x128xbf16, #tpu.memory_space<vmem>>, vector<256x128xbf16>
      tpu.vector_store %arg4[%c0_12, %c0_13], %13 {strides = array<i32>} : memref<256x128xbf16, #tpu.memory_space<vmem>>, vector<256x128xbf16>,
    } else {
    }
    return
  }
  func.func @transform_0(%arg0: i32, %arg1: i32) -> (i32, i32) {
    %c0_i32 = arith.constant 0 : i32
    return %arg0, %arg1 : i32, i32
  }
  func.func @transform_1(%arg0: i32, %arg1: i32) -> (i32, i32) {
    %c0_i32 = arith.constant 0 : i32
    %c0_i32_0 = arith.constant 0 : i32
    return %arg1, %c0_i32 : i32, i32
  }
  func.func @transform_2(%arg0: i32, %arg1: i32) -> (i32, i32) {
    %c0_i32 = arith.constant 0 : i32
    %c0_i32_0 = arith.constant 0 : i32
    return %arg0, %c0_i32 : i32, i32
  }
}

module attributes {stable_mosaic.version = 11 : i64} {
  func.func @_tag_layer_kernel(%arg0: i32, %arg1: memref<256x128xbf16, #tpu.memory_space<vmem>>, %arg2: memref<128x128xbf16, #tpu.memory_space<vmem>>, %arg3: memref<1x128xf32, #tpu.memory_space<vmem>>, %arg4: memref<256x128xbf16, #tpu.memory_space<vmem>>) attributes {dimension_semantics = [#tpu.dimension_semantics<parallel>], iteration_bounds = array<i64: 1>, scalar_prefetch = 0 : i64, scratch_operands = 0 : i64, tpu.core_type = #tpu.core_type<tc>, window_params = [{transform_indices = @transform_0, window_bounds = array<i64: 256, 128>}, {pipeline_mode = #tpu.pipeline_mode<synchronous>, transform_indices = @transform_1, window_bounds = array<i64: 128, 128>}, {pipeline_mode = #tpu.pipeline_mode<synchronous>, transform_indices = @transform_2, window_bounds = array<i64: 1, 128>}, {transform_indices = @transform_3, window_bounds = array<i64: 256, 128>}]} {
    %c0 = arith.constant 0 : index
    %c0_0 = arith.constant 0 : index
    %0 = vector.load %arg1[%c0, %c0_0] : memref<256x128xbf16, #tpu.memory_space<vmem>>, vector<256x128xbf16>
    %c0_1 = arith.constant 0 : index
    %c0_2 = arith.constant 0 : index
    %1 = vector.load %arg2[%c0_1, %c0_2] : memref<128x128xbf16, #tpu.memory_space<vmem>>, vector<128x128xbf16>
    %cst = arith.constant dense<0.000000e+00> : vector<256x128xf32>
    %2 = tpu.matmul %0, %1, %cst {dimension_numbers = #tpu.dot_dimension_numbers<[1], [0], [0], [1], [0, 0, 1, 1], [], []>} : vector<256x128xbf16>, vector<128x128xbf16>, vector<256x128xf32> -> vector<256x128xf32>
    %c0_3 = arith.constant 0 : index
    %c0_4 = arith.constant 0 : index
    %3 = vector.load %arg3[%c0_3, %c0_4] : memref<1x128xf32, #tpu.memory_space<vmem>>, vector<1x128xf32>
    %4 = vector.broadcast %3 : vector<1x128xf32> to vector<256x128xf32>
    %5 = arith.addf %2, %4 : vector<256x128xf32>
    %cst_5 = arith.constant 0.000000e+00 : f32
    %6 = vector.broadcast %cst_5 : f32 to vector<256x128xf32>
    %7 = arith.cmpf ogt, %5, %6 : vector<256x128xf32>
    %cst_6 = arith.constant 0.00999999977 : f32
    %8 = vector.broadcast %cst_6 : f32 to vector<256x128xf32>
    %9 = arith.mulf %8, %5 : vector<256x128xf32>
    %10 = arith.select %7, %5, %9 : vector<256x128xi1>, vector<256x128xf32>
    %11 = arith.truncf %10 : vector<256x128xf32> to vector<256x128xbf16>
    %c0_7 = arith.constant 0 : index
    %c0_8 = arith.constant 0 : index
    %12 = vector.load %arg4[%c0_7, %c0_8] : memref<256x128xbf16, #tpu.memory_space<vmem>>, vector<256x128xbf16>
    tpu.vector_store %arg4[%c0_7, %c0_8], %11 {strides = array<i32>} : memref<256x128xbf16, #tpu.memory_space<vmem>>, vector<256x128xbf16>,
    return
  }
  func.func @transform_0(%arg0: i32) -> (i32, i32) {
    %c0_i32 = arith.constant 0 : i32
    %c0_i32_0 = arith.constant 0 : i32
    return %arg0, %c0_i32 : i32, i32
  }
  func.func @transform_1(%arg0: i32) -> (i32, i32) {
    %c0_i32 = arith.constant 0 : i32
    %c0_i32_0 = arith.constant 0 : i32
    %c0_i32_1 = arith.constant 0 : i32
    return %c0_i32, %c0_i32_0 : i32, i32
  }
  func.func @transform_2(%arg0: i32) -> (i32, i32) {
    %c0_i32 = arith.constant 0 : i32
    %c0_i32_0 = arith.constant 0 : i32
    %c0_i32_1 = arith.constant 0 : i32
    return %c0_i32, %c0_i32_0 : i32, i32
  }
  func.func @transform_3(%arg0: i32) -> (i32, i32) {
    %c0_i32 = arith.constant 0 : i32
    %c0_i32_0 = arith.constant 0 : i32
    return %arg0, %c0_i32 : i32, i32
  }
}

module attributes {stable_mosaic.version = 11 : i64} {
  func.func @_tag_layer_kernel(%arg0: i32, %arg1: memref<256x128xbf16, #tpu.memory_space<vmem>>, %arg2: memref<128x128xbf16, #tpu.memory_space<vmem>>, %arg3: memref<1x128xf32, #tpu.memory_space<vmem>>, %arg4: memref<128x128xbf16, #tpu.memory_space<vmem>>, %arg5: memref<1x128xf32, #tpu.memory_space<vmem>>, %arg6: memref<256x128xf32, #tpu.memory_space<vmem>>) attributes {dimension_semantics = [#tpu.dimension_semantics<parallel>], iteration_bounds = array<i64: 1>, scalar_prefetch = 0 : i64, scratch_operands = 0 : i64, tpu.core_type = #tpu.core_type<tc>, window_params = [{transform_indices = @transform_0, window_bounds = array<i64: 256, 128>}, {pipeline_mode = #tpu.pipeline_mode<synchronous>, transform_indices = @transform_1, window_bounds = array<i64: 128, 128>}, {pipeline_mode = #tpu.pipeline_mode<synchronous>, transform_indices = @transform_2, window_bounds = array<i64: 1, 128>}, {pipeline_mode = #tpu.pipeline_mode<synchronous>, transform_indices = @transform_3, window_bounds = array<i64: 128, 128>}, {pipeline_mode = #tpu.pipeline_mode<synchronous>, transform_indices = @transform_4, window_bounds = array<i64: 1, 128>}, {transform_indices = @transform_5, window_bounds = array<i64: 256, 128>}]} {
    %c0 = arith.constant 0 : index
    %c0_0 = arith.constant 0 : index
    %0 = vector.load %arg1[%c0, %c0_0] : memref<256x128xbf16, #tpu.memory_space<vmem>>, vector<256x128xbf16>
    %c0_1 = arith.constant 0 : index
    %c0_2 = arith.constant 0 : index
    %1 = vector.load %arg2[%c0_1, %c0_2] : memref<128x128xbf16, #tpu.memory_space<vmem>>, vector<128x128xbf16>
    %cst = arith.constant dense<0.000000e+00> : vector<256x128xf32>
    %2 = tpu.matmul %0, %1, %cst {dimension_numbers = #tpu.dot_dimension_numbers<[1], [0], [0], [1], [0, 0, 1, 1], [], []>} : vector<256x128xbf16>, vector<128x128xbf16>, vector<256x128xf32> -> vector<256x128xf32>
    %c0_3 = arith.constant 0 : index
    %c0_4 = arith.constant 0 : index
    %3 = vector.load %arg3[%c0_3, %c0_4] : memref<1x128xf32, #tpu.memory_space<vmem>>, vector<1x128xf32>
    %4 = vector.broadcast %3 : vector<1x128xf32> to vector<256x128xf32>
    %5 = arith.addf %2, %4 : vector<256x128xf32>
    %cst_5 = arith.constant 0.000000e+00 : f32
    %6 = vector.broadcast %cst_5 : f32 to vector<256x128xf32>
    %7 = arith.cmpf ogt, %5, %6 : vector<256x128xf32>
    %cst_6 = arith.constant 0.00999999977 : f32
    %8 = vector.broadcast %cst_6 : f32 to vector<256x128xf32>
    %9 = arith.mulf %8, %5 : vector<256x128xf32>
    %10 = arith.select %7, %5, %9 : vector<256x128xi1>, vector<256x128xf32>
    %11 = arith.truncf %10 : vector<256x128xf32> to vector<256x128xbf16>
    %c0_7 = arith.constant 0 : index
    %c0_8 = arith.constant 0 : index
    %12 = vector.load %arg4[%c0_7, %c0_8] : memref<128x128xbf16, #tpu.memory_space<vmem>>, vector<128x128xbf16>
    %cst_9 = arith.constant dense<0.000000e+00> : vector<256x128xf32>
    %13 = tpu.matmul %11, %12, %cst_9 {dimension_numbers = #tpu.dot_dimension_numbers<[1], [0], [0], [1], [0, 0, 1, 1], [], []>} : vector<256x128xbf16>, vector<128x128xbf16>, vector<256x128xf32> -> vector<256x128xf32>
    %c0_10 = arith.constant 0 : index
    %c0_11 = arith.constant 0 : index
    %14 = vector.load %arg5[%c0_10, %c0_11] : memref<1x128xf32, #tpu.memory_space<vmem>>, vector<1x128xf32>
    %15 = vector.broadcast %14 : vector<1x128xf32> to vector<256x128xf32>
    %16 = arith.addf %13, %15 : vector<256x128xf32>
    %c0_12 = arith.constant 0 : index
    %c0_13 = arith.constant 0 : index
    %17 = vector.load %arg6[%c0_12, %c0_13] : memref<256x128xf32, #tpu.memory_space<vmem>>, vector<256x128xf32>
    tpu.vector_store %arg6[%c0_12, %c0_13], %16 {strides = array<i32>} : memref<256x128xf32, #tpu.memory_space<vmem>>, vector<256x128xf32>,
    return
  }
  func.func @transform_0(%arg0: i32) -> (i32, i32) {
    %c0_i32 = arith.constant 0 : i32
    %c0_i32_0 = arith.constant 0 : i32
    return %arg0, %c0_i32 : i32, i32
  }
  func.func @transform_1(%arg0: i32) -> (i32, i32) {
    %c0_i32 = arith.constant 0 : i32
    %c0_i32_0 = arith.constant 0 : i32
    %c0_i32_1 = arith.constant 0 : i32
    return %c0_i32, %c0_i32_0 : i32, i32
  }
  func.func @transform_2(%arg0: i32) -> (i32, i32) {
    %c0_i32 = arith.constant 0 : i32
    %c0_i32_0 = arith.constant 0 : i32
    %c0_i32_1 = arith.constant 0 : i32
    return %c0_i32, %c0_i32_0 : i32, i32
  }
  func.func @transform_3(%arg0: i32) -> (i32, i32) {
    %c0_i32 = arith.constant 0 : i32
    %c0_i32_0 = arith.constant 0 : i32
    %c0_i32_1 = arith.constant 0 : i32
    return %c0_i32, %c0_i32_0 : i32, i32
  }
  func.func @transform_4(%arg0: i32) -> (i32, i32) {
    %c0_i32 = arith.constant 0 : i32
    %c0_i32_0 = arith.constant 0 : i32
    %c0_i32_1 = arith.constant 0 : i32
    return %c0_i32, %c0_i32_0 : i32, i32
  }
  func.func @transform_5(%arg0: i32) -> (i32, i32) {
    %c0_i32 = arith.constant 0 : i32
    %c0_i32_0 = arith.constant 0 : i32
    return %arg0, %c0_i32 : i32, i32
  }
}

</mosaic_0001>

<bundles_post_ra>
// kernel: tag_node_reg_forward.15
= control target key start
LH: loop header
LB: loop body
LE: loop exit
PB: predicated region body
PF: predicated region fallthrough
CT: control target
= control target key end

     0   :  { %s1430_s1 = inlined_call_operand.vmem [shape: bf16[256,128], index: 1, kind: input, shape index: {}]   ;;  %s1431_s0 = inlined_call_operand.vmem [shape: bf16[256,256], index: 0, kind: input, shape index: {}]   ;;  %s1432_s2 = inlined_call_operand.vmem [shape: bf16[256,128], index: 2, kind: output, shape index: {}]  }
   0x1   :  { %v1159_v0 = vld [vmem:[%s1430_s1 + $0x40] sm:$0xff]   ;;  %v1161_v2 = vld [vmem:[%s1430_s1 + $0x48] sm:$0xff]   ;;  %v1163_v4 = vld [vmem:[%s1430_s1 + $0x50] sm:$0xff]  }
   0x2   :  { %v1160_v1 = vld [vmem:[%s1430_s1] sm:$0xff]   ;;  %1031 = vmatprep.subr.bf16.mxu0 %v1159_v0  ;;  %1143 = vmatprep.subr.bf16.mxu1 %v1159_v0  ;;  %v1162_v3 = vld [vmem:[%s1430_s1 + $0x8] sm:$0xff]   ;;  %v1164_v5 = vld [vmem:[%s1430_s1 + $0x10] sm:$0xff]  }
   0x3   :  { %1032 = vmatpush3.bf16.msra.mxu0 %v1160_v1  ;;  %1151 = vmatpush3.bf16.msra.mxu1 %v1160_v1  ;;  %v1165_v6 = vld [vmem:[%s1430_s1 + $0x58] sm:$0xff]   ;;  %v1167_v8 = vld [vmem:[%s1430_s1 + $0x60] sm:$0xff]   ;;  %v1169_v10 = vld [vmem:[%s1430_s1 + $0x68] sm:$0xff]  }
   0x4   :  { %1033 = vmatprep.subr.bf16.mxu0 %v1161_v2  ;;  %1144 = vmatprep.subr.bf16.mxu1 %v1161_v2  ;;  %v1166_v7 = vld [vmem:[%s1430_s1 + $0x18] sm:$0xff]   ;;  %v1168_v9 = vld [vmem:[%s1430_s1 + $0x20] sm:$0xff]   ;;  %v1170_v13 = vld [vmem:[%s1430_s1 + $0x28] sm:$0xff]  }
   0x5   :  { %v1177_v11 = vld [vmem:[%s1431_s0 + $0x4] ss:$8 sps:$4 sm:$0xff]   ;;  %v1171_v14 = vld [vmem:[%s1430_s1 + $0x70] sm:$0xff]   ;;  %v1173_v16 = vld [vmem:[%s1430_s1 + $0x78] sm:$0xff]  }
   0x6   :  { %v1180_v12 = vld [vmem:[%s1431_s0 + $0x84] ss:$8 sps:$4 sm:$0xff]   ;;  %432 = vmatprep.mubr.bf16.mxu0 %v1177_v11  ;;  %v1172_v15 = vld [vmem:[%s1430_s1 + $0x30] sm:$0xff]   ;;  %v1174_v17 = vld [vmem:[%s1430_s1 + $0x38] sm:$0xff]  }
   0x7   :  { %1034 = vmatpush3.bf16.msra.mxu0 %v1162_v3  ;;  %1152 = vmatpush3.bf16.msra.mxu1 %v1162_v3  ;;  %v1175_v18 = vld [vmem:[%s1431_s0] ss:$8 sps:$4 sm:$0xff]   ;;  %v1181_v20 = vld [vmem:[%s1431_s0 + $0x14] ss:$8 sps:$4 sm:$0xff]   ;;  %v1185_v22 = vld [vmem:[%s1431_s0 + $0x10] ss:$8 sps:$4 sm:$0xff]  }
   0x8   :  { %1035 = vmatprep.subr.bf16.mxu0 %v1163_v4  ;;  %1145 = vmatprep.subr.bf16.mxu1 %v1163_v4  ;;  %v1178_v19 = vld [vmem:[%s1431_s0 + $0x80] ss:$8 sps:$4 sm:$0xff]   ;;  %v1183_v21 = vld [vmem:[%s1431_s0 + $0x94] ss:$8 sps:$4 sm:$0xff]   ;;  %v1186_v23 = vld [vmem:[%s1431_s0 + $0x90] ss:$8 sps:$4 sm:$0xff]  }
   0x9   :  { %496 = vmatprep.mubr.bf16.mxu1 %v1180_v12  ;;  %v1187_v24 = vld [vmem:[%s1431_s0 + $0x24] ss:$8 sps:$4 sm:$0xff]   ;;  %v1191_v26 = vld [vmem:[%s1431_s0 + $0x20] ss:$8 sps:$4 sm:$0xff]   ;;  %v1193_v28 = vld [vmem:[%s1431_s0 + $0x34] ss:$8 sps:$4 sm:$0xff]  }
   0xa   :  { %v1189_v25 = vld [vmem:[%s1431_s0 + $0xa4] ss:$8 sps:$4 sm:$0xff]   ;;  %v1192_v27 = vld [vmem:[%s1431_s0 + $0xa0] ss:$8 sps:$4 sm:$0xff]   ;;  %v1195_v29 = vld [vmem:[%s1431_s0 + $0xb4] ss:$8 sps:$4 sm:$0xff]  }
   0xb   :  { %1036 = vmatpush3.bf16.msra.mxu0 %v1164_v5  ;;  %1153 = vmatpush3.bf16.msra.mxu1 %v1164_v5  ;;  %v1197_v30 = vld [vmem:[%s1431_s0 + $0x30] ss:$8 sps:$4 sm:$0xff]   ;;  %v1199_v32 = vld [vmem:[%s1431_s0 + $0x44] ss:$8 sps:$4 sm:$0xff]   ;;  %v1203_v34 = vld [vmem:[%s1431_s0 + $0x40] ss:$8 sps:$4 sm:$0xff]  }
   0xc   :  { %1037 = vmatprep.subr.bf16.mxu0 %v1165_v6  ;;  %1146 = vmatprep.subr.bf16.mxu1 %v1165_v6  ;;  %v1198_v31 = vld [vmem:[%s1431_s0 + $0xb0] ss:$8 sps:$4 sm:$0xff]   ;;  %v1201_v33 = vld [vmem:[%s1431_s0 + $0xc4] ss:$8 sps:$4 sm:$0xff]   ;;  %v1204_v35 = vld [vmem:[%s1431_s0 + $0xc0] ss:$8 sps:$4 sm:$0xff]  }
   0xd   :  { %v1205_v36 = vld [vmem:[%s1431_s0 + $0x54] ss:$8 sps:$4 sm:$0xff]   ;;  %v1209_v38 = vld [vmem:[%s1431_s0 + $0x50] ss:$8 sps:$4 sm:$0xff]   ;;  %v1211_v40 = vld [vmem:[%s1431_s0 + $0x64] ss:$8 sps:$4 sm:$0xff]  }
   0xe   :  { %v1207_v37 = vld [vmem:[%s1431_s0 + $0xd4] ss:$8 sps:$4 sm:$0xff]   ;;  %v1210_v39 = vld [vmem:[%s1431_s0 + $0xd0] ss:$8 sps:$4 sm:$0xff]   ;;  %v1213_v41 = vld [vmem:[%s1431_s0 + $0xe4] ss:$8 sps:$4 sm:$0xff]  }
   0xf   :  { %1038 = vmatpush3.bf16.msra.mxu0 %v1166_v7  ;;  %1154 = vmatpush3.bf16.msra.mxu1 %v1166_v7  ;;  %v1215_v42 = vld [vmem:[%s1431_s0 + $0x60] ss:$8 sps:$4 sm:$0xff]   ;;  %v1217_v44 = vld [vmem:[%s1431_s0 + $0x74] ss:$8 sps:$4 sm:$0xff]   ;;  %v1221_v46 = vld [vmem:[%s1431_s0 + $0x70] ss:$8 sps:$4 sm:$0xff]  }
  0x10   :  { %1039 = vmatprep.subr.bf16.mxu0 %v1167_v8  ;;  %1147 = vmatprep.subr.bf16.mxu1 %v1167_v8  ;;  %v1216_v43 = vld [vmem:[%s1431_s0 + $0xe0] ss:$8 sps:$4 sm:$0xff]   ;;  %v1219_v45 = vld [vmem:[%s1431_s0 + $0xf4] ss:$8 sps:$4 sm:$0xff]   ;;  %v1222_v47 = vld [vmem:[%s1431_s0 + $0xf0] ss:$8 sps:$4 sm:$0xff]  }
  0x13   :  { %1040 = vmatpush3.bf16.msra.mxu0 %v1168_v9  ;;  %1155 = vmatpush3.bf16.msra.mxu1 %v1168_v9 }
  0x14   :  { %1041 = vmatprep.subr.bf16.mxu0 %v1169_v10  ;;  %1148 = vmatprep.subr.bf16.mxu1 %v1169_v10 }
  0x17   :  { %1042 = vmatpush3.bf16.msra.mxu0 %v1170_v13  ;;  %1156 = vmatpush3.bf16.msra.mxu1 %v1170_v13 }
  0x18   :  { %1043 = vmatprep.subr.bf16.mxu0 %v1171_v14  ;;  %1149 = vmatprep.subr.bf16.mxu1 %v1171_v14 }
  0x1b   :  { %1044 = vmatpush3.bf16.msra.mxu0 %v1172_v15  ;;  %1157 = vmatpush3.bf16.msra.mxu1 %v1172_v15 }
  0x1c   :  { %1045 = vmatprep.subr.bf16.mxu0 %v1173_v16  ;;  %1150 = vmatprep.subr.bf16.mxu1 %v1173_v16 }
  0x1f   :  { %1046 = vmatpush3.bf16.msra.mxu0 %v1174_v17  ;;  %1158 = vmatpush3.bf16.msra.mxu1 %v1174_v17 }
  0x22   :  { %433 = vmatmul.mubr.bf16.vlgmr.msra.gmra.mrb[0].mxu0 %v1175_v18  ;;  %497 = vmatmul.mubr.bf16.vlgmr.msra.gmra.mrb[0].mxu1 %v1178_v19 }
  0x23   :  { %440 = vmatprep.mubr.bf16.mxu0 %v1181_v20  ;;  %504 = vmatprep.mubr.bf16.mxu1 %v1183_v21 }
  0x2a   :  { %441 = vmatmul.mubr.bf16.gmra.mrb[4].mxu0 %v1185_v22  ;;  %505 = vmatmul.mubr.bf16.gmra.mrb[4].mxu1 %v1186_v23 }
  0x2b   :  { %448 = vmatprep.mubr.bf16.mxu0 %v1187_v24  ;;  %512 = vmatprep.mubr.bf16.mxu1 %v1189_v25 }
  0x32   :  { %449 = vmatmul.mubr.bf16.gmra.mrb[8].mxu0 %v1191_v26  ;;  %513 = vmatmul.mubr.bf16.gmra.mrb[8].mxu1 %v1192_v27 }
  0x33   :  { %456 = vmatprep.mubr.bf16.mxu0 %v1193_v28  ;;  %520 = vmatprep.mubr.bf16.mxu1 %v1195_v29 }
  0x3a   :  { %457 = vmatmul.mubr.bf16.gmra.mrb[12].mxu0 %v1197_v30  ;;  %521 = vmatmul.mubr.bf16.gmra.mrb[12].mxu1 %v1198_v31 }
  0x3b   :  { %464 = vmatprep.mubr.bf16.mxu0 %v1199_v32  ;;  %528 = vmatprep.mubr.bf16.mxu1 %v1201_v33 }
  0x42   :  { %465 = vmatmul.mubr.bf16.gmra.mrb[16].mxu0 %v1203_v34  ;;  %529 = vmatmul.mubr.bf16.gmra.mrb[16].mxu1 %v1204_v35 }
  0x43   :  { %472 = vmatprep.mubr.bf16.mxu0 %v1205_v36  ;;  %536 = vmatprep.mubr.bf16.mxu1 %v1207_v37 }
  0x4a   :  { %473 = vmatmul.mubr.bf16.gmra.mrb[20].mxu0 %v1209_v38  ;;  %537 = vmatmul.mubr.bf16.gmra.mrb[20].mxu1 %v1210_v39 }
  0x4b   :  { %480 = vmatprep.mubr.bf16.mxu0 %v1211_v40  ;;  %544 = vmatprep.mubr.bf16.mxu1 %v1213_v41 }
  0x52   :  { %481 = vmatmul.mubr.bf16.gmra.mrb[24].mxu0 %v1215_v42  ;;  %545 = vmatmul.mubr.bf16.gmra.mrb[24].mxu1 %v1216_v43 }
  0x53   :  { %488 = vmatprep.mubr.bf16.mxu0 %v1217_v44  ;;  %552 = vmatprep.mubr.bf16.mxu1 %v1219_v45 }
  0x5a   :  { %489 = vmatmul.mubr.bf16.gmra.mrb[28].mxu0 %v1221_v46  ;;  %553 = vmatmul.mubr.bf16.gmra.mrb[28].mxu1 %v1222_v47 }
  0xf5   :  { %v1047_v48 = vpop.f32.mrb[0].mxu0  ;;  %v1095_v49 = vpop.f32.mrb[0].mxu1 }
  0xf6   :  { %v1048_v50 = vpop.f32.mrb[1].mxu0  ;;  %v1096_v51 = vpop.f32.mrb[1].mxu1 }
  0xf7   :  { %v1049_v52 = vadd.f32 %v1048_v50, %v1047_v48  ;;  %v1097_v53 = vadd.f32 %v1096_v51, %v1095_v49  ;;  %v1050_v54 = vpop.f32.mrb[2].mxu0  ;;  %v1098_v55 = vpop.f32.mrb[2].mxu1 }
  0xf8   :  { %v1051_v56 = vpop.f32.mrb[3].mxu0  ;;  %v1099_v57 = vpop.f32.mrb[3].mxu1 }
  0xf9   :  { %v1052_v58 = vadd.f32 %v1051_v56, %v1050_v54  ;;  %v1100_v59 = vadd.f32 %v1099_v57, %v1098_v55 }
  0xfb   :  { %v939_v60 = vpack.c.bf16 %v1052_v58, %v1049_v52  ;;  %v979_v61 = vpack.c.bf16 %v1100_v59, %v1097_v53 }
  0xfd   :  { %940 = vst [vmem:[%s1432_s2] sm:$0xff] %v939_v60   ;;  %1023 = vst [vmem:[%s1432_s2 + $0x40] sm:$0xff] %v979_v61   ;;  %v1053_v62 = vpop.f32.mrb[4].mxu0  ;;  %v1101_v63 = vpop.f32.mrb[4].mxu1 }
  0xfe   :  { %v1054_v0 = vpop.f32.mrb[5].mxu0  ;;  %v1102_v1 = vpop.f32.mrb[5].mxu1 }
  0xff   :  { %v1055_v2 = vadd.f32 %v1054_v0, %v1053_v62  ;;  %v1103_v3 = vadd.f32 %v1102_v1, %v1101_v63  ;;  %v1056_v4 = vpop.f32.mrb[6].mxu0  ;;  %v1104_v5 = vpop.f32.mrb[6].mxu1 }
 0x100   :  { %v1057_v6 = vpop.f32.mrb[7].mxu0  ;;  %v1105_v7 = vpop.f32.mrb[7].mxu1 }
 0x101   :  { %v1058_v8 = vadd.f32 %v1057_v6, %v1056_v4  ;;  %v1106_v9 = vadd.f32 %v1105_v7, %v1104_v5 }
 0x103   :  { %v944_v10 = vpack.c.bf16 %v1058_v8, %v1055_v2  ;;  %v984_v11 = vpack.c.bf16 %v1106_v9, %v1103_v3 }
 0x105   :  { %1016 = vst [vmem:[%s1432_s2 + $0x8] sm:$0xff] %v944_v10   ;;  %1024 = vst [vmem:[%s1432_s2 + $0x48] sm:$0xff] %v984_v11   ;;  %v1059_v12 = vpop.f32.mrb[8].mxu0  ;;  %v1107_v13 = vpop.f32.mrb[8].mxu1 }
 0x106   :  { %v1060_v14 = vpop.f32.mrb[9].mxu0  ;;  %v1108_v15 = vpop.f32.mrb[9].mxu1 }
 0x107   :  { %v1061_v16 = vadd.f32 %v1060_v14, %v1059_v12  ;;  %v1109_v17 = vadd.f32 %v1108_v15, %v1107_v13  ;;  %v1062_v18 = vpop.f32.mrb[10].mxu0  ;;  %v1110_v19 = vpop.f32.mrb[10].mxu1 }
 0x108   :  { %v1063_v20 = vpop.f32.mrb[11].mxu0  ;;  %v1111_v21 = vpop.f32.mrb[11].mxu1 }
 0x109   :  { %v1064_v22 = vadd.f32 %v1063_v20, %v1062_v18  ;;  %v1112_v23 = vadd.f32 %v1111_v21, %v1110_v19 }
 0x10b   :  { %v949_v24 = vpack.c.bf16 %v1064_v22, %v1061_v16  ;;  %v989_v25 = vpack.c.bf16 %v1112_v23, %v1109_v17 }
 0x10d   :  { %1017 = vst [vmem:[%s1432_s2 + $0x10] sm:$0xff] %v949_v24   ;;  %1025 = vst [vmem:[%s1432_s2 + $0x50] sm:$0xff] %v989_v25   ;;  %v1065_v26 = vpop.f32.mrb[12].mxu0  ;;  %v1113_v27 = vpop.f32.mrb[12].mxu1 }
 0x10e   :  { %v1066_v28 = vpop.f32.mrb[13].mxu0  ;;  %v1114_v29 = vpop.f32.mrb[13].mxu1 }
 0x10f   :  { %v1067_v30 = vadd.f32 %v1066_v28, %v1065_v26  ;;  %v1115_v31 = vadd.f32 %v1114_v29, %v1113_v27  ;;  %v1068_v32 = vpop.f32.mrb[14].mxu0  ;;  %v1116_v33 = vpop.f32.mrb[14].mxu1 }
 0x110   :  { %v1069_v34 = vpop.f32.mrb[15].mxu0  ;;  %v1117_v35 = vpop.f32.mrb[15].mxu1 }
 0x111   :  { %v1070_v36 = vadd.f32 %v1069_v34, %v1068_v32  ;;  %v1118_v37 = vadd.f32 %v1117_v35, %v1116_v33 }
 0x113   :  { %v954_v38 = vpack.c.bf16 %v1070_v36, %v1067_v30  ;;  %v994_v39 = vpack.c.bf16 %v1118_v37, %v1115_v31 }
 0x115   :  { %1018 = vst [vmem:[%s1432_s2 + $0x18] sm:$0xff] %v954_v38   ;;  %1026 = vst [vmem:[%s1432_s2 + $0x58] sm:$0xff] %v994_v39   ;;  %v1071_v40 = vpop.f32.mrb[16].mxu0  ;;  %v1119_v41 = vpop.f32.mrb[16].mxu1 }
 0x116   :  { %v1072_v42 = vpop.f32.mrb[17].mxu0  ;;  %v1120_v43 = vpop.f32.mrb[17].mxu1 }
 0x117   :  { %v1073_v44 = vadd.f32 %v1072_v42, %v1071_v40  ;;  %v1121_v45 = vadd.f32 %v1120_v43, %v1119_v41  ;;  %v1074_v46 = vpop.f32.mrb[18].mxu0  ;;  %v1122_v47 = vpop.f32.mrb[18].mxu1 }
 0x118   :  { %v1075_v48 = vpop.f32.mrb[19].mxu0  ;;  %v1123_v49 = vpop.f32.mrb[19].mxu1 }
 0x119   :  { %v1076_v50 = vadd.f32 %v1075_v48, %v1074_v46  ;;  %v1124_v51 = vadd.f32 %v1123_v49, %v1122_v47 }
 0x11b   :  { %v959_v52 = vpack.c.bf16 %v1076_v50, %v1073_v44  ;;  %v999_v53 = vpack.c.bf16 %v1124_v51, %v1121_v45 }
 0x11d   :  { %1019 = vst [vmem:[%s1432_s2 + $0x20] sm:$0xff] %v959_v52   ;;  %1027 = vst [vmem:[%s1432_s2 + $0x60] sm:$0xff] %v999_v53   ;;  %v1077_v54 = vpop.f32.mrb[20].mxu0  ;;  %v1125_v55 = vpop.f32.mrb[20].mxu1 }
 0x11e   :  { %v1078_v56 = vpop.f32.mrb[21].mxu0  ;;  %v1126_v57 = vpop.f32.mrb[21].mxu1 }
 0x11f   :  { %v1079_v58 = vadd.f32 %v1078_v56, %v1077_v54  ;;  %v1127_v59 = vadd.f32 %v1126_v57, %v1125_v55  ;;  %v1080_v60 = vpop.f32.mrb[22].mxu0  ;;  %v1128_v61 = vpop.f32.mrb[22].mxu1 }
 0x120   :  { %v1081_v62 = vpop.f32.mrb[23].mxu0  ;;  %v1129_v63 = vpop.f32.mrb[23].mxu1 }
 0x121   :  { %v1082_v0 = vadd.f32 %v1081_v62, %v1080_v60  ;;  %v1130_v1 = vadd.f32 %v1129_v63, %v1128_v61 }
 0x123   :  { %v964_v2 = vpack.c.bf16 %v1082_v0, %v1079_v58  ;;  %v1004_v3 = vpack.c.bf16 %v1130_v1, %v1127_v59 }
 0x125   :  { %1020 = vst [vmem:[%s1432_s2 + $0x28] sm:$0xff] %v964_v2   ;;  %1028 = vst [vmem:[%s1432_s2 + $0x68] sm:$0xff] %v1004_v3   ;;  %v1083_v4 = vpop.f32.mrb[24].mxu0  ;;  %v1131_v5 = vpop.f32.mrb[24].mxu1 }
 0x126   :  { %v1084_v6 = vpop.f32.mrb[25].mxu0  ;;  %v1132_v7 = vpop.f32.mrb[25].mxu1 }
 0x127   :  { %v1085_v8 = vadd.f32 %v1084_v6, %v1083_v4  ;;  %v1133_v9 = vadd.f32 %v1132_v7, %v1131_v5  ;;  %v1086_v10 = vpop.f32.mrb[26].mxu0  ;;  %v1134_v11 = vpop.f32.mrb[26].mxu1 }
 0x128   :  { %v1087_v12 = vpop.f32.mrb[27].mxu0  ;;  %v1135_v13 = vpop.f32.mrb[27].mxu1 }
 0x129   :  { %v1088_v14 = vadd.f32 %v1087_v12, %v1086_v10  ;;  %v1136_v15 = vadd.f32 %v1135_v13, %v1134_v11 }
 0x12b   :  { %v969_v16 = vpack.c.bf16 %v1088_v14, %v1085_v8  ;;  %v1009_v17 = vpack.c.bf16 %v1136_v15, %v1133_v9 }
 0x12d   :  { %1021 = vst [vmem:[%s1432_s2 + $0x30] sm:$0xff] %v969_v16   ;;  %1029 = vst [vmem:[%s1432_s2 + $0x70] sm:$0xff] %v1009_v17   ;;  %v1089_v18 = vpop.f32.mrb[28].mxu0  ;;  %v1137_v19 = vpop.f32.mrb[28].mxu1 }
 0x12e   :  { %v1090_v20 = vpop.f32.mrb[29].mxu0  ;;  %v1138_v21 = vpop.f32.mrb[29].mxu1 }
 0x12f   :  { %v1091_v22 = vadd.f32 %v1090_v20, %v1089_v18  ;;  %v1139_v23 = vadd.f32 %v1138_v21, %v1137_v19  ;;  %v1092_v24 = vpop.f32.mrb[30].mxu0  ;;  %v1140_v25 = vpop.f32.mrb[30].mxu1 }
 0x130   :  { %v1093_v26 = vpop.f32.mrb[31].mxu0  ;;  %v1141_v27 = vpop.f32.mrb[31].mxu1 }
 0x131   :  { %v1094_v28 = vadd.f32 %v1093_v26, %v1092_v24  ;;  %v1142_v29 = vadd.f32 %v1141_v27, %v1140_v25 }
 0x133   :  { %v974_v30 = vpack.c.bf16 %v1094_v28, %v1091_v22  ;;  %v1014_v31 = vpack.c.bf16 %v1142_v29, %v1139_v23 }
 0x135   :  { %1022 = vst [vmem:[%s1432_s2 + $0x38] sm:$0xff] %v974_v30   ;;  %1030 = vst [vmem:[%s1432_s2 + $0x78] sm:$0xff] %v1014_v31  }

// kernel: tag_node_reg_forward.19
= control target key start
LH: loop header
LB: loop body
LE: loop exit
PB: predicated region body
PF: predicated region fallthrough
CT: control target
= control target key end

     0   :  { %s1114_s1 = inlined_call_operand.vmem [shape: bf16[128,128], index: 1, kind: input, shape index: {}]   ;;  %s1115_s0 = inlined_call_operand.vmem [shape: bf16[256,128], index: 0, kind: input, shape index: {}]   ;;  %s1116_s2 = inlined_call_operand.vmem [shape: f32[1,128], index: 2, kind: input, shape index: {}]   ;;  %s1117_s3 = inlined_call_operand.vmem [shape: bf16[256,128], index: 3, kind: output, shape index: {}]  }
   0x1   :  { %v907_v0 = vld [vmem:[%s1114_s1] sm:$0xff]   ;;  %v908_v1 = vld [vmem:[%s1114_s1 + $0x8] sm:$0xff]   ;;  %v909_v2 = vld [vmem:[%s1114_s1 + $0x10] sm:$0xff]  }
   0x2   :  { %843 = vmatprep.subr.bf16.mxu0 %v907_v0  ;;  %891 = vmatprep.subr.bf16.mxu1 %v907_v0  ;;  %v910_v3 = vld [vmem:[%s1114_s1 + $0x18] sm:$0xff]   ;;  %v915_v4 = vld [vmem:[%s1115_s0] sm:$0xff]   ;;  %v912_v7 = vld [vmem:[%s1114_s1 + $0x28] sm:$0xff]  }
   0x3   :  { %844 = vmatpush3.bf16.msra.mxu0 %v907_v0  ;;  %899 = vmatpush3.bf16.msra.mxu1 %v907_v0  ;;  %v916_v5 = vld [vmem:[%s1115_s0 + $0x40] sm:$0xff]   ;;  %v913_v8 = vld [vmem:[%s1114_s1 + $0x30] sm:$0xff]   ;;  %v914_v9 = vld [vmem:[%s1114_s1 + $0x38] sm:$0xff]  }
   0x4   :  { %845 = vmatprep.subr.bf16.mxu0 %v908_v1  ;;  %892 = vmatprep.subr.bf16.mxu1 %v908_v1  ;;  %v911_v6 = vld [vmem:[%s1114_s1 + $0x20] sm:$0xff]   ;;  %v917_v10 = vld [vmem:[%s1115_s0 + $0x8] sm:$0xff]   ;;  %v919_v12 = vld [vmem:[%s1115_s0 + $0x10] sm:$0xff]  }
   0x5   :  { %859 = vmatprep.mubr.bf16.mxu0 %v915_v4  ;;  %875 = vmatprep.mubr.bf16.mxu1 %v916_v5  ;;  %v918_v11 = vld [vmem:[%s1115_s0 + $0x48] sm:$0xff]   ;;  %v920_v13 = vld [vmem:[%s1115_s0 + $0x50] sm:$0xff]   ;;  %v921_v14 = vld [vmem:[%s1115_s0 + $0x18] sm:$0xff]  }
   0x6   :  { %v922_v15 = vld [vmem:[%s1115_s0 + $0x58] sm:$0xff]   ;;  %v923_v16 = vld [vmem:[%s1115_s0 + $0x20] sm:$0xff]   ;;  %v925_v18 = vld [vmem:[%s1115_s0 + $0x28] sm:$0xff]  }
   0x7   :  { %846 = vmatpush3.bf16.msra.mxu0 %v908_v1  ;;  %900 = vmatpush3.bf16.msra.mxu1 %v908_v1  ;;  %v924_v17 = vld [vmem:[%s1115_s0 + $0x60] sm:$0xff]   ;;  %v926_v19 = vld [vmem:[%s1115_s0 + $0x68] sm:$0xff]   ;;  %v927_v20 = vld [vmem:[%s1115_s0 + $0x30] sm:$0xff]  }
   0x8   :  { %847 = vmatprep.subr.bf16.mxu0 %v909_v2  ;;  %893 = vmatprep.subr.bf16.mxu1 %v909_v2  ;;  %v928_v21 = vld [vmem:[%s1115_s0 + $0x70] sm:$0xff]   ;;  %v929_v22 = vld [vmem:[%s1115_s0 + $0x38] sm:$0xff]   ;;  %v1026_v24 = vld [vmem:[%s1116_s2] ss:$0 sm:$0xff] }
   0x9   :  { %v930_v23 = vld [vmem:[%s1115_s0 + $0x78] sm:$0xff]  }
   0xb   :  { %848 = vmatpush3.bf16.msra.mxu0 %v909_v2  ;;  %901 = vmatpush3.bf16.msra.mxu1 %v909_v2 }
   0xc   :  { %849 = vmatprep.subr.bf16.mxu0 %v910_v3  ;;  %894 = vmatprep.subr.bf16.mxu1 %v910_v3 }
   0xf   :  { %850 = vmatpush3.bf16.msra.mxu0 %v910_v3  ;;  %902 = vmatpush3.bf16.msra.mxu1 %v910_v3 }
  0x10   :  { %851 = vmatprep.subr.bf16.mxu0 %v911_v6  ;;  %895 = vmatprep.subr.bf16.mxu1 %v911_v6 }
  0x13   :  { %852 = vmatpush3.bf16.msra.mxu0 %v911_v6  ;;  %903 = vmatpush3.bf16.msra.mxu1 %v911_v6 }
  0x14   :  { %853 = vmatprep.subr.bf16.mxu0 %v912_v7  ;;  %896 = vmatprep.subr.bf16.mxu1 %v912_v7 }
  0x17   :  { %854 = vmatpush3.bf16.msra.mxu0 %v912_v7  ;;  %904 = vmatpush3.bf16.msra.mxu1 %v912_v7 }
  0x18   :  { %855 = vmatprep.subr.bf16.mxu0 %v913_v8  ;;  %897 = vmatprep.subr.bf16.mxu1 %v913_v8 }
  0x1b   :  { %856 = vmatpush3.bf16.msra.mxu0 %v913_v8  ;;  %905 = vmatpush3.bf16.msra.mxu1 %v913_v8 }
  0x1c   :  { %857 = vmatprep.subr.bf16.mxu0 %v914_v9  ;;  %898 = vmatprep.subr.bf16.mxu1 %v914_v9 }
  0x1f   :  { %858 = vmatpush3.bf16.msra.mxu0 %v914_v9  ;;  %906 = vmatpush3.bf16.msra.mxu1 %v914_v9 }
  0x22   :  { %860 = vmatmul.mubr.bf16.vlgmr.msra.gmra.mrb[0].mxu0 %v917_v10  ;;  %876 = vmatmul.mubr.bf16.vlgmr.msra.gmra.mrb[0].mxu1 %v918_v11 }
  0x23   :  { %863 = vmatprep.mubr.bf16.mxu0 %v919_v12  ;;  %879 = vmatprep.mubr.bf16.mxu1 %v920_v13 }
  0x2a   :  { %864 = vmatmul.mubr.bf16.gmra.mrb[4].mxu0 %v921_v14  ;;  %880 = vmatmul.mubr.bf16.gmra.mrb[4].mxu1 %v922_v15 }
  0x2b   :  { %867 = vmatprep.mubr.bf16.mxu0 %v923_v16  ;;  %883 = vmatprep.mubr.bf16.mxu1 %v924_v17 }
  0x32   :  { %868 = vmatmul.mubr.bf16.gmra.mrb[8].mxu0 %v925_v18  ;;  %884 = vmatmul.mubr.bf16.gmra.mrb[8].mxu1 %v926_v19 }
  0x33   :  { %871 = vmatprep.mubr.bf16.mxu0 %v927_v20  ;;  %887 = vmatprep.mubr.bf16.mxu1 %v928_v21 }
  0x3a   :  { %872 = vmatmul.mubr.bf16.gmra.mrb[12].mxu0 %v929_v22  ;;  %888 = vmatmul.mubr.bf16.gmra.mrb[12].mxu1 %v930_v23 }
  0xf5   :  { %v861_v25 = vpop.f32.mrb[0].mxu0  ;;  %v877_v26 = vpop.f32.mrb[0].mxu1 }
  0xf6   :  { %v257_v27 = vadd.f32 %v861_v25, %v1026_v24  ;;  %v321_v28 = vadd.f32 %v877_v26, %v1026_v24  ;;  %v248_v29 = vpop.f32.mrb[1].mxu0  ;;  %v312_v30 = vpop.f32.mrb[1].mxu1 }
  0xf7   :  { %v249_v31 = vadd.f32 %v1026_v24, %v248_v29  ;;  %v313_v32 = vadd.f32 %v1026_v24, %v312_v30  ;;  %v862_v33 = vpop.f32.mrb[2].mxu0  ;;  %v878_v34 = vpop.f32.mrb[2].mxu1 }
  0xf8   :  { %vm377_vm0 = vcmp.gt.f32.partialorder %v257_v27, 0.0  ;;  %v409_v35 = vmul.f32 0.01, %v257_v27  ;;  %vm393_vm1 = vcmp.gt.f32.partialorder %v321_v28, 0.0  ;;  %v425_v36 = vmul.f32 0.01, %v321_v28 }
  0xf9   :  { %vm375_vm2 = vcmp.gt.f32.partialorder %v249_v31, 0.0  ;;  %v407_v37 = vmul.f32 0.01, %v249_v31  ;;  %vm391_vm3 = vcmp.gt.f32.partialorder %v313_v32, 0.0  ;;  %v423_v38 = vmul.f32 0.01, %v313_v32 }
  0xfa   :  { %v260_v39 = vadd.f32 %v862_v33, %v1026_v24  ;;  %v324_v40 = vadd.f32 %v878_v34, %v1026_v24  ;;  %v251_v41 = vpop.f32.mrb[3].mxu0  ;;  %v315_v42 = vpop.f32.mrb[3].mxu1  ;;  %v441_v43 = vsel %vm377_vm0, %v257_v27, %v409_v35  ;;  %v457_v44 = vsel %vm393_vm1, %v321_v28, %v425_v36 }
  0xfb   :  { %v252_v45 = vadd.f32 %v1026_v24, %v251_v41  ;;  %v316_v46 = vadd.f32 %v1026_v24, %v315_v42  ;;  %v439_v51 = vsel %vm375_vm2, %v249_v31, %v407_v37  ;;  %v455_v52 = vsel %vm391_vm3, %v313_v32, %v423_v38 }
  0xfc   :  { %vm378_vm4 = vcmp.gt.f32.partialorder %v260_v39, 0.0  ;;  %v410_v47 = vmul.f32 0.01, %v260_v39  ;;  %vm394_vm5 = vcmp.gt.f32.partialorder %v324_v40, 0.0  ;;  %v426_v48 = vmul.f32 0.01, %v324_v40 }
  0xfd   :  { %vm376_vm6 = vcmp.gt.f32.partialorder %v252_v45, 0.0  ;;  %v408_v49 = vmul.f32 0.01, %v252_v45  ;;  %vm392_vm7 = vcmp.gt.f32.partialorder %v316_v46, 0.0  ;;  %v424_v50 = vmul.f32 0.01, %v316_v46 }
  0xfe   :  { %v442_v53 = vsel %vm378_vm4, %v260_v39, %v410_v47  ;;  %v458_v54 = vsel %vm394_vm5, %v324_v40, %v426_v48  ;;  %v865_v55 = vpop.f32.mrb[4].mxu0  ;;  %v881_v56 = vpop.f32.mrb[4].mxu1 }
  0xff   :  { %v732_v57 = vpack.c.bf16 %v442_v53, %v441_v43  ;;  %v772_v58 = vpack.c.bf16 %v458_v54, %v457_v44  ;;  %v440_v59 = vsel %vm376_vm6, %v252_v45, %v408_v49  ;;  %v456_v60 = vsel %vm392_vm7, %v316_v46, %v424_v50  ;;  %v264_v61 = vpop.f32.mrb[5].mxu0  ;;  %v328_v62 = vpop.f32.mrb[5].mxu1 }
 0x100   :  { %v727_v63 = vpack.c.bf16 %v440_v59, %v439_v51  ;;  %v767_v0 = vpack.c.bf16 %v456_v60, %v455_v52  ;;  %v273_v1 = vadd.f32 %v865_v55, %v1026_v24  ;;  %v337_v2 = vadd.f32 %v881_v56, %v1026_v24  ;;  %v866_v3 = vpop.f32.mrb[6].mxu0  ;;  %v882_v4 = vpop.f32.mrb[6].mxu1 }
 0x101   :  { %804 = vst [vmem:[%s1117_s3 + $0x8] sm:$0xff] %v732_v57   ;;  %812 = vst [vmem:[%s1117_s3 + $0x48] sm:$0xff] %v772_v58   ;;  %v265_v5 = vadd.f32 %v1026_v24, %v264_v61  ;;  %v329_v6 = vadd.f32 %v1026_v24, %v328_v62  ;;  %v276_v7 = vadd.f32 %v866_v3, %v1026_v24  ;;  %v267_v9 = vpop.f32.mrb[7].mxu0  ;;  %v331_v10 = vpop.f32.mrb[7].mxu1 }
 0x102   :  { %v340_v8 = vadd.f32 %v882_v4, %v1026_v24  ;;  %728 = vst [vmem:[%s1117_s3] sm:$0xff] %v727_v63   ;;  %811 = vst [vmem:[%s1117_s3 + $0x40] sm:$0xff] %v767_v0   ;;  %vm381_vm8 = vcmp.gt.f32.partialorder %v273_v1, 0.0  ;;  %v413_v11 = vmul.f32 0.01, %v273_v1  ;;  %vm397_vm9 = vcmp.gt.f32.partialorder %v337_v2, 0.0 }
 0x103   :  { %v429_v12 = vmul.f32 0.01, %v337_v2  ;;  %vm379_vm10 = vcmp.gt.f32.partialorder %v265_v5, 0.0  ;;  %v411_v13 = vmul.f32 0.01, %v265_v5  ;;  %vm395_vm11 = vcmp.gt.f32.partialorder %v329_v6, 0.0 }
 0x104   :  { %v445_v14 = vsel %vm381_vm8, %v273_v1, %v413_v11  ;;  %v427_v15 = vmul.f32 0.01, %v329_v6  ;;  %vm382_vm12 = vcmp.gt.f32.partialorder %v276_v7, 0.0  ;;  %v414_v16 = vmul.f32 0.01, %v276_v7 }
 0x105   :  { %v461_v17 = vsel %vm397_vm9, %v337_v2, %v429_v12  ;;  %v443_v18 = vsel %vm379_vm10, %v265_v5, %v411_v13  ;;  %vm398_vm13 = vcmp.gt.f32.partialorder %v340_v8, 0.0  ;;  %v430_v19 = vmul.f32 0.01, %v340_v8  ;;  %v869_v20 = vpop.f32.mrb[8].mxu0  ;;  %v885_v21 = vpop.f32.mrb[8].mxu1 }
 0x106   :  { %v446_v22 = vsel %vm382_vm12, %v276_v7, %v414_v16  ;;  %v268_v23 = vadd.f32 %v1026_v24, %v267_v9  ;;  %v332_v25 = vadd.f32 %v1026_v24, %v331_v10  ;;  %v289_v26 = vadd.f32 %v869_v20, %v1026_v24  ;;  %v280_v27 = vpop.f32.mrb[9].mxu0  ;;  %v344_v28 = vpop.f32.mrb[9].mxu1 }
 0x107   :  { %v742_v29 = vpack.c.bf16 %v446_v22, %v445_v14  ;;  %v462_v30 = vsel %vm398_vm13, %v340_v8, %v430_v19  ;;  %v353_v31 = vadd.f32 %v885_v21, %v1026_v24  ;;  %v281_v32 = vadd.f32 %v1026_v24, %v280_v27  ;;  %v870_v33 = vpop.f32.mrb[10].mxu0  ;;  %v886_v34 = vpop.f32.mrb[10].mxu1 }
 0x108   :  { %v782_v35 = vpack.c.bf16 %v462_v30, %v461_v17  ;;  %vm380_vm14 = vcmp.gt.f32.partialorder %v268_v23, 0.0  ;;  %v412_v36 = vmul.f32 0.01, %v268_v23  ;;  %vm396_vm15 = vcmp.gt.f32.partialorder %v332_v25, 0.0  ;;  %v283_v37 = vpop.f32.mrb[11].mxu0  ;;  %v347_v38 = vpop.f32.mrb[11].mxu1 }
 0x109   :  { %806 = vst [vmem:[%s1117_s3 + $0x18] sm:$0xff] %v742_v29   ;;  %v428_v39 = vmul.f32 0.01, %v332_v25  ;;  %vm385_vm0 = vcmp.gt.f32.partialorder %v289_v26, 0.0  ;;  %v417_v40 = vmul.f32 0.01, %v289_v26  ;;  %v459_v41 = vsel %vm395_vm11, %v329_v6, %v427_v15 }
 0x10a   :  { %vm401_vm1 = vcmp.gt.f32.partialorder %v353_v31, 0.0  ;;  %814 = vst [vmem:[%s1117_s3 + $0x58] sm:$0xff] %v782_v35   ;;  %v444_v42 = vsel %vm380_vm14, %v268_v23, %v412_v36  ;;  %v433_v43 = vmul.f32 0.01, %v353_v31  ;;  %vm383_vm2 = vcmp.gt.f32.partialorder %v281_v32, 0.0 }
 0x10b   :  { %v737_v44 = vpack.c.bf16 %v444_v42, %v443_v18  ;;  %v460_v45 = vsel %vm396_vm15, %v332_v25, %v428_v39  ;;  %v415_v46 = vmul.f32 0.01, %v281_v32  ;;  %v345_v47 = vadd.f32 %v1026_v24, %v344_v28 }
 0x10c   :  { %v777_v48 = vpack.c.bf16 %v460_v45, %v459_v41  ;;  %v449_v49 = vsel %vm385_vm0, %v289_v26, %v417_v40  ;;  %v465_v50 = vsel %vm401_vm1, %v353_v31, %v433_v43  ;;  %v292_v51 = vadd.f32 %v870_v33, %v1026_v24 }
 0x10d   :  { %805 = vst [vmem:[%s1117_s3 + $0x10] sm:$0xff] %v737_v44   ;;  %vm399_vm3 = vcmp.gt.f32.partialorder %v345_v47, 0.0  ;;  %v431_v52 = vmul.f32 0.01, %v345_v47  ;;  %v356_v53 = vadd.f32 %v886_v34, %v1026_v24  ;;  %v284_v54 = vadd.f32 %v1026_v24, %v283_v37  ;;  %v873_v55 = vpop.f32.mrb[12].mxu0  ;;  %v889_v56 = vpop.f32.mrb[12].mxu1 }
 0x10e   :  { %813 = vst [vmem:[%s1117_s3 + $0x50] sm:$0xff] %v777_v48   ;;  %vm386_vm4 = vcmp.gt.f32.partialorder %v292_v51, 0.0  ;;  %v418_v57 = vmul.f32 0.01, %v292_v51  ;;  %v348_v58 = vadd.f32 %v1026_v24, %v347_v38  ;;  %v305_v59 = vadd.f32 %v873_v55, %v1026_v24  ;;  %v296_v60 = vpop.f32.mrb[13].mxu0  ;;  %v360_v61 = vpop.f32.mrb[13].mxu1 }
 0x10f   :  { %v447_v62 = vsel %vm383_vm2, %v281_v32, %v415_v46  ;;  %vm402_vm5 = vcmp.gt.f32.partialorder %v356_v53, 0.0  ;;  %v434_v63 = vmul.f32 0.01, %v356_v53  ;;  %vm384_vm6 = vcmp.gt.f32.partialorder %v284_v54, 0.0  ;;  %v874_v0 = vpop.f32.mrb[14].mxu0  ;;  %v890_v1 = vpop.f32.mrb[14].mxu1 }
 0x110   :  { %v450_v2 = vsel %vm386_vm4, %v292_v51, %v418_v57  ;;  %v416_v3 = vmul.f32 0.01, %v284_v54  ;;  %vm400_vm7 = vcmp.gt.f32.partialorder %v348_v58, 0.0  ;;  %v432_v4 = vmul.f32 0.01, %v348_v58  ;;  %v299_v5 = vpop.f32.mrb[15].mxu0 }
 0x111   :  { %v463_v6 = vsel %vm399_vm3, %v345_v47, %v431_v52  ;;  %v752_v7 = vpack.c.bf16 %v450_v2, %v449_v49  ;;  %v466_v8 = vsel %vm402_vm5, %v356_v53, %v434_v63  ;;  %v421_v9 = vmul.f32 0.01, %v305_v59  ;;  %v363_v10 = vpop.f32.mrb[15].mxu1 }
 0x112   :  { %v792_v11 = vpack.c.bf16 %v466_v8, %v465_v50  ;;  %v448_v12 = vsel %vm384_vm6, %v284_v54, %v416_v3  ;;  %v464_v13 = vsel %vm400_vm7, %v348_v58, %v432_v4  ;;  %v369_v14 = vadd.f32 %v889_v56, %v1026_v24 }
 0x113   :  { %808 = vst [vmem:[%s1117_s3 + $0x28] sm:$0xff] %v752_v7   ;;  %v747_v15 = vpack.c.bf16 %v448_v12, %v447_v62  ;;  %v787_v16 = vpack.c.bf16 %v464_v13, %v463_v6  ;;  %vm389_vm8 = vcmp.gt.f32.partialorder %v305_v59, 0.0  ;;  %v297_v17 = vadd.f32 %v1026_v24, %v296_v60 }
 0x114   :  { %816 = vst [vmem:[%s1117_s3 + $0x68] sm:$0xff] %v792_v11   ;;  %vm405_vm9 = vcmp.gt.f32.partialorder %v369_v14, 0.0  ;;  %v437_v18 = vmul.f32 0.01, %v369_v14  ;;  %v361_v19 = vadd.f32 %v1026_v24, %v360_v61  ;;  %v308_v20 = vadd.f32 %v874_v0, %v1026_v24 }
 0x115   :  { %807 = vst [vmem:[%s1117_s3 + $0x20] sm:$0xff] %v747_v15   ;;  %815 = vst [vmem:[%s1117_s3 + $0x60] sm:$0xff] %v787_v16   ;;  %v419_v21 = vmul.f32 0.01, %v297_v17  ;;  %v372_v22 = vadd.f32 %v890_v1, %v1026_v24  ;;  %v300_v23 = vadd.f32 %v1026_v24, %v299_v5  ;;  %v453_v25 = vsel %vm389_vm8, %v305_v59, %v421_v9 }
 0x116   :  { %vm387_vm10 = vcmp.gt.f32.partialorder %v297_v17, 0.0  ;;  %vm390_vm11 = vcmp.gt.f32.partialorder %v308_v20, 0.0  ;;  %v469_v26 = vsel %vm405_vm9, %v369_v14, %v437_v18  ;;  %v422_v27 = vmul.f32 0.01, %v308_v20 }
 0x117   :  { %vm406_vm12 = vcmp.gt.f32.partialorder %v372_v22, 0.0  ;;  %v438_v28 = vmul.f32 0.01, %v372_v22  ;;  %vm403_vm13 = vcmp.gt.f32.partialorder %v361_v19, 0.0  ;;  %vm388_vm14 = vcmp.gt.f32.partialorder %v300_v23, 0.0 }
 0x118   :  { %v420_v29 = vmul.f32 0.01, %v300_v23  ;;  %v364_v30 = vadd.f32 %v1026_v24, %v363_v10  ;;  %v451_v31 = vsel %vm387_vm10, %v297_v17, %v419_v21  ;;  %v435_v32 = vmul.f32 0.01, %v361_v19 }
 0x119   :  { %v454_v33 = vsel %vm390_vm11, %v308_v20, %v422_v27  ;;  %v470_v34 = vsel %vm406_vm12, %v372_v22, %v438_v28 }
 0x11a   :  { %v762_v35 = vpack.c.bf16 %v454_v33, %v453_v25  ;;  %v802_v36 = vpack.c.bf16 %v470_v34, %v469_v26  ;;  %v452_v37 = vsel %vm388_vm14, %v300_v23, %v420_v29  ;;  %vm404_vm15 = vcmp.gt.f32.partialorder %v364_v30, 0.0 }
 0x11b   :  { %v757_v38 = vpack.c.bf16 %v452_v37, %v451_v31  ;;  %v436_v39 = vmul.f32 0.01, %v364_v30  ;;  %v467_v24 = vsel %vm403_vm13, %v361_v19, %v435_v32 }
 0x11c   :  { %810 = vst [vmem:[%s1117_s3 + $0x38] sm:$0xff] %v762_v35   ;;  %818 = vst [vmem:[%s1117_s3 + $0x78] sm:$0xff] %v802_v36  }
 0x11d   :  { %809 = vst [vmem:[%s1117_s3 + $0x30] sm:$0xff] %v757_v38   ;;  %v468_v40 = vsel %vm404_vm15, %v364_v30, %v436_v39 }
 0x11e   :  { %v797_v41 = vpack.c.bf16 %v468_v40, %v467_v24 }
 0x120   :  { %817 = vst [vmem:[%s1117_s3 + $0x70] sm:$0xff] %v797_v41  }

// kernel: tag_node_reg_forward.29
= control target key start
LH: loop header
LB: loop body
LE: loop exit
PB: predicated region body
PF: predicated region fallthrough
CT: control target
= control target key end

     0   :  { %s1267_s1 = inlined_call_operand.vmem [shape: bf16[128,128], index: 1, kind: input, shape index: {}]   ;;  %s1268_s0 = inlined_call_operand.vmem [shape: bf16[256,128], index: 0, kind: input, shape index: {}]   ;;  %s1269_s3 = inlined_call_operand.vmem [shape: bf16[128,128], index: 3, kind: input, shape index: {}]   ;;  %s1270_s2 = inlined_call_operand.vmem [shape: f32[1,128], index: 2, kind: input, shape index: {}]   ;;  %s1271_s4 = inlined_call_operand.vmem [shape: f32[1,128], index: 4, kind: input, shape index: {}]   ;;  %s1272_s5 = inlined_call_operand.vmem [shape: f32[256,128], index: 5, kind: output, shape index: {}]  }
   0x1   :  { %v939_v0 = vld [vmem:[%s1267_s1] sm:$0xff]   ;;  %v940_v1 = vld [vmem:[%s1267_s1 + $0x8] sm:$0xff]   ;;  %v941_v2 = vld [vmem:[%s1267_s1 + $0x10] sm:$0xff]  }
   0x2   :  { %843 = vmatprep.subr.bf16.mxu0 %v939_v0  ;;  %v942_v3 = vld [vmem:[%s1267_s1 + $0x18] sm:$0xff]   ;;  %v947_v4 = vld [vmem:[%s1268_s0] sm:$0xff]   ;;  %v944_v6 = vld [vmem:[%s1267_s1 + $0x28] sm:$0xff]  }
   0x3   :  { %844 = vmatpush3.bf16.msra.mxu0 %v939_v0  ;;  %859 = vmatprep.mubr.bf16.mxu0 %v947_v4  ;;  %v943_v5 = vld [vmem:[%s1267_s1 + $0x20] sm:$0xff]   ;;  %v945_v7 = vld [vmem:[%s1267_s1 + $0x30] sm:$0xff]   ;;  %v946_v8 = vld [vmem:[%s1267_s1 + $0x38] sm:$0xff]  }
   0x4   :  { %845 = vmatprep.subr.bf16.mxu0 %v940_v1  ;;  %v963_v9 = vld [vmem:[%s1269_s3] sm:$0xff]   ;;  %v964_v10 = vld [vmem:[%s1269_s3 + $0x8] sm:$0xff]   ;;  %v965_v12 = vld [vmem:[%s1269_s3 + $0x10] sm:$0xff]  }
   0x5   :  { %891 = vmatprep.subr.bf16.mxu1 %v963_v9  ;;  %v948_v11 = vld [vmem:[%s1268_s0 + $0x8] sm:$0xff]   ;;  %v949_v13 = vld [vmem:[%s1268_s0 + $0x10] sm:$0xff]   ;;  %v966_v14 = vld [vmem:[%s1269_s3 + $0x18] sm:$0xff]  }
   0x6   :  { %892 = vmatpush3.bf16.msra.mxu1 %v963_v9  ;;  %v967_v15 = vld [vmem:[%s1269_s3 + $0x20] sm:$0xff]   ;;  %v950_v16 = vld [vmem:[%s1268_s0 + $0x18] sm:$0xff]   ;;  %v952_v18 = vld [vmem:[%s1268_s0 + $0x28] sm:$0xff]  }
   0x7   :  { %846 = vmatpush3.bf16.msra.mxu0 %v940_v1  ;;  %893 = vmatprep.subr.bf16.mxu1 %v964_v10  ;;  %v951_v17 = vld [vmem:[%s1268_s0 + $0x20] sm:$0xff]   ;;  %v953_v19 = vld [vmem:[%s1268_s0 + $0x30] sm:$0xff]   ;;  %v954_v20 = vld [vmem:[%s1268_s0 + $0x38] sm:$0xff]  }
   0x8   :  { %847 = vmatprep.subr.bf16.mxu0 %v941_v2  ;;  %v955_v21 = vld [vmem:[%s1268_s0 + $0x40] sm:$0xff]   ;;  %v956_v22 = vld [vmem:[%s1268_s0 + $0x48] sm:$0xff]   ;;  %v957_v23 = vld [vmem:[%s1268_s0 + $0x50] sm:$0xff]  }
   0x9   :  { %v958_v24 = vld [vmem:[%s1268_s0 + $0x58] sm:$0xff]   ;;  %v959_v25 = vld [vmem:[%s1268_s0 + $0x60] sm:$0xff]   ;;  %v960_v26 = vld [vmem:[%s1268_s0 + $0x68] sm:$0xff]  }
   0xa   :  { %894 = vmatpush3.bf16.msra.mxu1 %v964_v10  ;;  %v961_v27 = vld [vmem:[%s1268_s0 + $0x70] sm:$0xff]   ;;  %v962_v28 = vld [vmem:[%s1268_s0 + $0x78] sm:$0xff]   ;;  %v968_v29 = vld [vmem:[%s1269_s3 + $0x28] sm:$0xff]  }
   0xb   :  { %848 = vmatpush3.bf16.msra.mxu0 %v941_v2  ;;  %895 = vmatprep.subr.bf16.mxu1 %v965_v12  ;;  %v969_v30 = vld [vmem:[%s1269_s3 + $0x30] sm:$0xff]   ;;  %v970_v31 = vld [vmem:[%s1269_s3 + $0x38] sm:$0xff]   ;;  %v1100_v32 = vld [vmem:[%s1270_s2] ss:$0 sm:$0xff] }
   0xc   :  { %849 = vmatprep.subr.bf16.mxu0 %v942_v3 }
   0xe   :  { %896 = vmatpush3.bf16.msra.mxu1 %v965_v12 }
   0xf   :  { %850 = vmatpush3.bf16.msra.mxu0 %v942_v3  ;;  %897 = vmatprep.subr.bf16.mxu1 %v966_v14 }
  0x10   :  { %851 = vmatprep.subr.bf16.mxu0 %v943_v5 }
  0x12   :  { %898 = vmatpush3.bf16.msra.mxu1 %v966_v14 }
  0x13   :  { %852 = vmatpush3.bf16.msra.mxu0 %v943_v5  ;;  %899 = vmatprep.subr.bf16.mxu1 %v967_v15 }
  0x14   :  { %853 = vmatprep.subr.bf16.mxu0 %v944_v6 }
  0x16   :  { %900 = vmatpush3.bf16.msra.mxu1 %v967_v15 }
  0x17   :  { %854 = vmatpush3.bf16.msra.mxu0 %v944_v6  ;;  %901 = vmatprep.subr.bf16.mxu1 %v968_v29 }
  0x18   :  { %855 = vmatprep.subr.bf16.mxu0 %v945_v7 }
  0x1a   :  { %902 = vmatpush3.bf16.msra.mxu1 %v968_v29 }
  0x1b   :  { %856 = vmatpush3.bf16.msra.mxu0 %v945_v7  ;;  %903 = vmatprep.subr.bf16.mxu1 %v969_v30 }
  0x1c   :  { %857 = vmatprep.subr.bf16.mxu0 %v946_v8 }
  0x1e   :  { %904 = vmatpush3.bf16.msra.mxu1 %v969_v30 }
  0x1f   :  { %858 = vmatpush3.bf16.msra.mxu0 %v946_v8  ;;  %905 = vmatprep.subr.bf16.mxu1 %v970_v31 }
  0x22   :  { %860 = vmatmul.mubr.bf16.vlgmr.msra.gmra.mrb[0].mxu0 %v948_v11  ;;  %906 = vmatpush3.bf16.msra.mxu1 %v970_v31 }
  0x23   :  { %863 = vmatprep.mubr.bf16.mxu0 %v949_v13 }
  0x2a   :  { %864 = vmatmul.mubr.bf16.gmra.mrb[4].mxu0 %v950_v16 }
  0x2b   :  { %867 = vmatprep.mubr.bf16.mxu0 %v951_v17 }
  0x32   :  { %868 = vmatmul.mubr.bf16.gmra.mrb[8].mxu0 %v952_v18 }
  0x33   :  { %871 = vmatprep.mubr.bf16.mxu0 %v953_v19 }
  0x3a   :  { %872 = vmatmul.mubr.bf16.gmra.mrb[12].mxu0 %v954_v20 }
  0x3b   :  { %875 = vmatprep.mubr.bf16.mxu0 %v955_v21 }
  0x42   :  { %876 = vmatmul.mubr.bf16.gmra.mrb[16].mxu0 %v956_v22 }
  0x43   :  { %879 = vmatprep.mubr.bf16.mxu0 %v957_v23 }
  0x4a   :  { %880 = vmatmul.mubr.bf16.gmra.mrb[20].mxu0 %v958_v24 }
  0x4b   :  { %883 = vmatprep.mubr.bf16.mxu0 %v959_v25 }
  0x52   :  { %884 = vmatmul.mubr.bf16.gmra.mrb[24].mxu0 %v960_v26 }
  0x53   :  { %887 = vmatprep.mubr.bf16.mxu0 %v961_v27 }
  0x5a   :  { %888 = vmatmul.mubr.bf16.gmra.mrb[28].mxu0 %v962_v28 }
  0xf5   :  { %v861_v33 = vpop.f32.mrb[0].mxu0 }
  0xf6   :  { %v263_v34 = vadd.f32 %v861_v33, %v1100_v32  ;;  %v254_v35 = vpop.f32.mrb[1].mxu0 }
  0xf7   :  { %v255_v36 = vadd.f32 %v1100_v32, %v254_v35  ;;  %v862_v37 = vpop.f32.mrb[2].mxu0 }
  0xf8   :  { %v415_v38 = vmul.f32 0.01, %v263_v34  ;;  %v266_v39 = vadd.f32 %v862_v37, %v1100_v32  ;;  %v257_v40 = vpop.f32.mrb[3].mxu0  ;;  %vm383_vm0 = vcmp.gt.f32.partialorder %v263_v34, 0.0 }
  0xf9   :  { %v413_v41 = vmul.f32 0.01, %v255_v36  ;;  %v258_v42 = vadd.f32 %v1100_v32, %v257_v40  ;;  %vm381_vm2 = vcmp.gt.f32.partialorder %v255_v36, 0.0 }
  0xfa   :  { %vm384_vm1 = vcmp.gt.f32.partialorder %v266_v39, 0.0  ;;  %v416_v43 = vmul.f32 0.01, %v266_v39  ;;  %v447_v45 = vsel %vm383_vm0, %v263_v34, %v415_v38 }
  0xfb   :  { %v414_v44 = vmul.f32 0.01, %v258_v42  ;;  %vm382_vm3 = vcmp.gt.f32.partialorder %v258_v42, 0.0  ;;  %v445_v48 = vsel %vm381_vm2, %v255_v36, %v413_v41 }
  0xfc   :  { %v448_v46 = vsel %vm384_vm1, %v266_v39, %v416_v43 }
  0xfd   :  { %v865_v47 = vpop.f32.mrb[4].mxu0  ;;  %v446_v49 = vsel %vm382_vm3, %v258_v42, %v414_v44  ;;  %v478_v50 = vpack.c.bf16 %v448_v46, %v447_v45 }
  0xfe   :  { %v279_v51 = vadd.f32 %v865_v47, %v1100_v32  ;;  %v270_v52 = vpop.f32.mrb[5].mxu0  ;;  %v477_v53 = vpack.c.bf16 %v446_v49, %v445_v48 }
  0xff   :  { %v271_v54 = vadd.f32 %v1100_v32, %v270_v52  ;;  %v866_v55 = vpop.f32.mrb[6].mxu0 }
 0x100   :  { %v419_v56 = vmul.f32 0.01, %v279_v51  ;;  %v282_v57 = vadd.f32 %v866_v55, %v1100_v32  ;;  %v273_v58 = vpop.f32.mrb[7].mxu0  ;;  %907 = vmatprep.mubr.bf16.mxu1 %v477_v53  ;;  %vm387_vm4 = vcmp.gt.f32.partialorder %v279_v51, 0.0 }
 0x101   :  { %v417_v59 = vmul.f32 0.01, %v271_v54  ;;  %v274_v60 = vadd.f32 %v1100_v32, %v273_v58  ;;  %908 = vmatmul.mubr.bf16.vlgmr.msra.gmra.mrb[0].mxu1 %v478_v50  ;;  %vm385_vm5 = vcmp.gt.f32.partialorder %v271_v54, 0.0 }
 0x102   :  { %vm388_vm6 = vcmp.gt.f32.partialorder %v282_v57, 0.0  ;;  %v420_v61 = vmul.f32 0.01, %v282_v57  ;;  %v451_v63 = vsel %vm387_vm4, %v279_v51, %v419_v56 }
 0x103   :  { %vm386_vm7 = vcmp.gt.f32.partialorder %v274_v60, 0.0  ;;  %v418_v62 = vmul.f32 0.01, %v274_v60  ;;  %v449_v2 = vsel %vm385_vm5, %v271_v54, %v417_v59 }
 0x104   :  { %v452_v0 = vsel %vm388_vm6, %v282_v57, %v420_v61 }
 0x105   :  { %v869_v1 = vpop.f32.mrb[8].mxu0  ;;  %v450_v3 = vsel %vm386_vm7, %v274_v60, %v418_v62  ;;  %v480_v4 = vpack.c.bf16 %v452_v0, %v451_v63 }
 0x106   :  { %v295_v5 = vadd.f32 %v869_v1, %v1100_v32  ;;  %v286_v6 = vpop.f32.mrb[9].mxu0  ;;  %v479_v7 = vpack.c.bf16 %v450_v3, %v449_v2 }
 0x107   :  { %v287_v8 = vadd.f32 %v1100_v32, %v286_v6  ;;  %v870_v9 = vpop.f32.mrb[10].mxu0 }
 0x108   :  { %v423_v10 = vmul.f32 0.01, %v295_v5  ;;  %v298_v11 = vadd.f32 %v870_v9, %v1100_v32  ;;  %v289_v12 = vpop.f32.mrb[11].mxu0  ;;  %911 = vmatprep.mubr.bf16.mxu1 %v479_v7  ;;  %vm391_vm8 = vcmp.gt.f32.partialorder %v295_v5, 0.0 }
 0x109   :  { %v421_v13 = vmul.f32 0.01, %v287_v8  ;;  %v290_v14 = vadd.f32 %v1100_v32, %v289_v12  ;;  %912 = vmatmul.mubr.bf16.gmra.mrb[4].mxu1 %v480_v4  ;;  %vm389_vm9 = vcmp.gt.f32.partialorder %v287_v8, 0.0 }
 0x10a   :  { %vm392_vm10 = vcmp.gt.f32.partialorder %v298_v11, 0.0  ;;  %v424_v15 = vmul.f32 0.01, %v298_v11  ;;  %v455_v17 = vsel %vm391_vm8, %v295_v5, %v423_v10 }
 0x10b   :  { %vm390_vm11 = vcmp.gt.f32.partialorder %v290_v14, 0.0  ;;  %v422_v16 = vmul.f32 0.01, %v290_v14  ;;  %v453_v20 = vsel %vm389_vm9, %v287_v8, %v421_v13 }
 0x10c   :  { %v456_v18 = vsel %vm392_vm10, %v298_v11, %v424_v15 }
 0x10d   :  { %v873_v19 = vpop.f32.mrb[12].mxu0  ;;  %v454_v21 = vsel %vm390_vm11, %v290_v14, %v422_v16  ;;  %v482_v22 = vpack.c.bf16 %v456_v18, %v455_v17 }
 0x10e   :  { %v311_v23 = vadd.f32 %v873_v19, %v1100_v32  ;;  %v302_v24 = vpop.f32.mrb[13].mxu0  ;;  %v481_v25 = vpack.c.bf16 %v454_v21, %v453_v20 }
 0x10f   :  { %v303_v26 = vadd.f32 %v1100_v32, %v302_v24  ;;  %v874_v27 = vpop.f32.mrb[14].mxu0 }
 0x110   :  { %v427_v28 = vmul.f32 0.01, %v311_v23  ;;  %v314_v29 = vadd.f32 %v874_v27, %v1100_v32  ;;  %v305_v30 = vpop.f32.mrb[15].mxu0  ;;  %915 = vmatprep.mubr.bf16.mxu1 %v481_v25  ;;  %vm395_vm12 = vcmp.gt.f32.partialorder %v311_v23, 0.0 }
 0x111   :  { %v425_v31 = vmul.f32 0.01, %v303_v26  ;;  %v306_v33 = vadd.f32 %v1100_v32, %v305_v30  ;;  %916 = vmatmul.mubr.bf16.gmra.mrb[8].mxu1 %v482_v22  ;;  %vm393_vm13 = vcmp.gt.f32.partialorder %v303_v26, 0.0 }
 0x112   :  { %vm396_vm14 = vcmp.gt.f32.partialorder %v314_v29, 0.0  ;;  %v428_v34 = vmul.f32 0.01, %v314_v29  ;;  %v459_v36 = vsel %vm395_vm12, %v311_v23, %v427_v28 }
 0x113   :  { %vm394_vm15 = vcmp.gt.f32.partialorder %v306_v33, 0.0  ;;  %v426_v35 = vmul.f32 0.01, %v306_v33  ;;  %v457_v39 = vsel %vm393_vm13, %v303_v26, %v425_v31 }
 0x114   :  { %v460_v37 = vsel %vm396_vm14, %v314_v29, %v428_v34 }
 0x115   :  { %v877_v38 = vpop.f32.mrb[16].mxu0  ;;  %v458_v40 = vsel %vm394_vm15, %v306_v33, %v426_v35  ;;  %v484_v41 = vpack.c.bf16 %v460_v37, %v459_v36 }
 0x116   :  { %v327_v42 = vadd.f32 %v877_v38, %v1100_v32  ;;  %v318_v43 = vpop.f32.mrb[17].mxu0  ;;  %v483_v44 = vpack.c.bf16 %v458_v40, %v457_v39 }
 0x117   :  { %v319_v45 = vadd.f32 %v1100_v32, %v318_v43  ;;  %v878_v46 = vpop.f32.mrb[18].mxu0 }
 0x118   :  { %v431_v47 = vmul.f32 0.01, %v327_v42  ;;  %v330_v48 = vadd.f32 %v878_v46, %v1100_v32  ;;  %v321_v49 = vpop.f32.mrb[19].mxu0  ;;  %919 = vmatprep.mubr.bf16.mxu1 %v483_v44  ;;  %vm399_vm0 = vcmp.gt.f32.partialorder %v327_v42, 0.0 }
 0x119   :  { %v429_v50 = vmul.f32 0.01, %v319_v45  ;;  %v322_v51 = vadd.f32 %v1100_v32, %v321_v49  ;;  %920 = vmatmul.mubr.bf16.gmra.mrb[12].mxu1 %v484_v41  ;;  %vm397_vm1 = vcmp.gt.f32.partialorder %v319_v45, 0.0 }
 0x11a   :  { %vm400_vm2 = vcmp.gt.f32.partialorder %v330_v48, 0.0  ;;  %v432_v52 = vmul.f32 0.01, %v330_v48  ;;  %v463_v54 = vsel %vm399_vm0, %v327_v42, %v431_v47 }
 0x11b   :  { %vm398_vm3 = vcmp.gt.f32.partialorder %v322_v51, 0.0  ;;  %v430_v53 = vmul.f32 0.01, %v322_v51  ;;  %v461_v57 = vsel %vm397_vm1, %v319_v45, %v429_v50 }
 0x11c   :  { %v464_v55 = vsel %vm400_vm2, %v330_v48, %v432_v52 }
 0x11d   :  { %v881_v56 = vpop.f32.mrb[20].mxu0  ;;  %v462_v58 = vsel %vm398_vm3, %v322_v51, %v430_v53  ;;  %v486_v59 = vpack.c.bf16 %v464_v55, %v463_v54  ;;  %v1137_v51 = vld [vmem:[%s1271_s4] ss:$0 sm:$0xff] }
 0x11e   :  { %v343_v60 = vadd.f32 %v881_v56, %v1100_v32  ;;  %v334_v61 = vpop.f32.mrb[21].mxu0  ;;  %v485_v62 = vpack.c.bf16 %v462_v58, %v461_v57 }
 0x11f   :  { %v335_v63 = vadd.f32 %v1100_v32, %v334_v61  ;;  %v882_v0 = vpop.f32.mrb[22].mxu0 }
 0x120   :  { %v435_v1 = vmul.f32 0.01, %v343_v60  ;;  %v346_v2 = vadd.f32 %v882_v0, %v1100_v32  ;;  %v337_v3 = vpop.f32.mrb[23].mxu0  ;;  %923 = vmatprep.mubr.bf16.mxu1 %v485_v62  ;;  %vm403_vm4 = vcmp.gt.f32.partialorder %v343_v60, 0.0 }
 0x121   :  { %v433_v4 = vmul.f32 0.01, %v335_v63  ;;  %v338_v5 = vadd.f32 %v1100_v32, %v337_v3  ;;  %924 = vmatmul.mubr.bf16.gmra.mrb[16].mxu1 %v486_v59  ;;  %vm401_vm5 = vcmp.gt.f32.partialorder %v335_v63, 0.0 }
 0x122   :  { %vm404_vm6 = vcmp.gt.f32.partialorder %v346_v2, 0.0  ;;  %v436_v6 = vmul.f32 0.01, %v346_v2  ;;  %v467_v8 = vsel %vm403_vm4, %v343_v60, %v435_v1 }
 0x123   :  { %vm402_vm7 = vcmp.gt.f32.partialorder %v338_v5, 0.0  ;;  %v434_v7 = vmul.f32 0.01, %v338_v5  ;;  %v465_v11 = vsel %vm401_vm5, %v335_v63, %v433_v4 }
 0x124   :  { %v468_v9 = vsel %vm404_vm6, %v346_v2, %v436_v6 }
 0x125   :  { %v885_v10 = vpop.f32.mrb[24].mxu0  ;;  %v466_v12 = vsel %vm402_vm7, %v338_v5, %v434_v7  ;;  %v488_v13 = vpack.c.bf16 %v468_v9, %v467_v8 }
 0x126   :  { %v359_v14 = vadd.f32 %v885_v10, %v1100_v32  ;;  %v350_v15 = vpop.f32.mrb[25].mxu0  ;;  %v487_v16 = vpack.c.bf16 %v466_v12, %v465_v11 }
 0x127   :  { %v351_v17 = vadd.f32 %v1100_v32, %v350_v15  ;;  %v886_v18 = vpop.f32.mrb[26].mxu0 }
 0x128   :  { %v439_v19 = vmul.f32 0.01, %v359_v14  ;;  %v362_v20 = vadd.f32 %v886_v18, %v1100_v32  ;;  %v353_v21 = vpop.f32.mrb[27].mxu0  ;;  %927 = vmatprep.mubr.bf16.mxu1 %v487_v16  ;;  %vm407_vm8 = vcmp.gt.f32.partialorder %v359_v14, 0.0 }
 0x129   :  { %v437_v22 = vmul.f32 0.01, %v351_v17  ;;  %v354_v23 = vadd.f32 %v1100_v32, %v353_v21  ;;  %928 = vmatmul.mubr.bf16.gmra.mrb[20].mxu1 %v488_v13  ;;  %vm405_vm9 = vcmp.gt.f32.partialorder %v351_v17, 0.0 }
 0x12a   :  { %vm408_vm10 = vcmp.gt.f32.partialorder %v362_v20, 0.0  ;;  %v440_v24 = vmul.f32 0.01, %v362_v20  ;;  %v471_v26 = vsel %vm407_vm8, %v359_v14, %v439_v19 }
 0x12b   :  { %vm406_vm11 = vcmp.gt.f32.partialorder %v354_v23, 0.0  ;;  %v438_v25 = vmul.f32 0.01, %v354_v23  ;;  %v469_v29 = vsel %vm405_vm9, %v351_v17, %v437_v22 }
 0x12c   :  { %v472_v27 = vsel %vm408_vm10, %v362_v20, %v440_v24 }
 0x12d   :  { %v889_v28 = vpop.f32.mrb[28].mxu0  ;;  %v470_v30 = vsel %vm406_vm11, %v354_v23, %v438_v25  ;;  %v490_v31 = vpack.c.bf16 %v472_v27, %v471_v26 }
 0x12e   :  { %v375_v33 = vadd.f32 %v889_v28, %v1100_v32  ;;  %v366_v34 = vpop.f32.mrb[29].mxu0  ;;  %v489_v35 = vpack.c.bf16 %v470_v30, %v469_v29 }
 0x12f   :  { %v367_v36 = vadd.f32 %v1100_v32, %v366_v34  ;;  %v890_v37 = vpop.f32.mrb[30].mxu0 }
 0x130   :  { %v443_v38 = vmul.f32 0.01, %v375_v33  ;;  %v378_v39 = vadd.f32 %v890_v37, %v1100_v32  ;;  %v369_v40 = vpop.f32.mrb[31].mxu0  ;;  %931 = vmatprep.mubr.bf16.mxu1 %v489_v35  ;;  %vm411_vm12 = vcmp.gt.f32.partialorder %v375_v33, 0.0 }
 0x131   :  { %v441_v41 = vmul.f32 0.01, %v367_v36  ;;  %v370_v42 = vadd.f32 %v1100_v32, %v369_v40  ;;  %932 = vmatmul.mubr.bf16.gmra.mrb[24].mxu1 %v490_v31  ;;  %vm409_vm13 = vcmp.gt.f32.partialorder %v367_v36, 0.0 }
 0x132   :  { %vm412_vm14 = vcmp.gt.f32.partialorder %v378_v39, 0.0  ;;  %v444_v43 = vmul.f32 0.01, %v378_v39  ;;  %v475_v45 = vsel %vm411_vm12, %v375_v33, %v443_v38 }
 0x133   :  { %vm410_vm15 = vcmp.gt.f32.partialorder %v370_v42, 0.0  ;;  %v442_v44 = vmul.f32 0.01, %v370_v42  ;;  %v473_v47 = vsel %vm409_vm13, %v367_v36, %v441_v41 }
 0x134   :  { %v476_v46 = vsel %vm412_vm14, %v378_v39, %v444_v43 }
 0x135   :  { %v474_v48 = vsel %vm410_vm15, %v370_v42, %v442_v44  ;;  %v492_v49 = vpack.c.bf16 %v476_v46, %v475_v45 }
 0x136   :  { %v491_v50 = vpack.c.bf16 %v474_v48, %v473_v47 }
 0x138   :  { %935 = vmatprep.mubr.bf16.mxu1 %v491_v50 }
 0x139   :  { %936 = vmatmul.mubr.bf16.gmra.mrb[28].mxu1 %v492_v49 }
 0x1d4   :  { %v909_v32 = vpop.f32.mrb[0].mxu1 }
 0x1d5   :  { %v607_v52 = vadd.f32 %v909_v32, %v1137_v51  ;;  %v598_v53 = vpop.f32.mrb[1].mxu1 }
 0x1d6   :  { %v599_v54 = vadd.f32 %v1137_v51, %v598_v53  ;;  %v910_v55 = vpop.f32.mrb[2].mxu1 }
 0x1d7   :  { %727 = vst [vmem:[%s1272_s5 + $0x10] sm:$0xff] %v607_v52  ;;  %v610_v56 = vadd.f32 %v910_v55, %v1137_v51  ;;  %v601_v57 = vpop.f32.mrb[3].mxu1 }
 0x1d8   :  { %725 = vst [vmem:[%s1272_s5] sm:$0xff] %v599_v54  ;;  %v602_v58 = vadd.f32 %v1137_v51, %v601_v57 }
 0x1d9   :  { %728 = vst [vmem:[%s1272_s5 + $0x18] sm:$0xff] %v610_v56 }
 0x1da   :  { %726 = vst [vmem:[%s1272_s5 + $0x8] sm:$0xff] %v602_v58 }
 0x1dc   :  { %v913_v59 = vpop.f32.mrb[4].mxu1 }
 0x1dd   :  { %v623_v60 = vadd.f32 %v913_v59, %v1137_v51  ;;  %v614_v61 = vpop.f32.mrb[5].mxu1 }
 0x1de   :  { %v615_v62 = vadd.f32 %v1137_v51, %v614_v61  ;;  %v914_v63 = vpop.f32.mrb[6].mxu1 }
 0x1df   :  { %731 = vst [vmem:[%s1272_s5 + $0x30] sm:$0xff] %v623_v60  ;;  %v626_v0 = vadd.f32 %v914_v63, %v1137_v51  ;;  %v617_v1 = vpop.f32.mrb[7].mxu1 }
 0x1e0   :  { %729 = vst [vmem:[%s1272_s5 + $0x20] sm:$0xff] %v615_v62  ;;  %v618_v2 = vadd.f32 %v1137_v51, %v617_v1 }
 0x1e1   :  { %732 = vst [vmem:[%s1272_s5 + $0x38] sm:$0xff] %v626_v0 }
 0x1e2   :  { %730 = vst [vmem:[%s1272_s5 + $0x28] sm:$0xff] %v618_v2 }
 0x1e4   :  { %v917_v3 = vpop.f32.mrb[8].mxu1 }
 0x1e5   :  { %v639_v4 = vadd.f32 %v917_v3, %v1137_v51  ;;  %v630_v5 = vpop.f32.mrb[9].mxu1 }
 0x1e6   :  { %v631_v6 = vadd.f32 %v1137_v51, %v630_v5  ;;  %v918_v7 = vpop.f32.mrb[10].mxu1 }
 0x1e7   :  { %735 = vst [vmem:[%s1272_s5 + $0x50] sm:$0xff] %v639_v4  ;;  %v642_v8 = vadd.f32 %v918_v7, %v1137_v51  ;;  %v633_v9 = vpop.f32.mrb[11].mxu1 }
 0x1e8   :  { %733 = vst [vmem:[%s1272_s5 + $0x40] sm:$0xff] %v631_v6  ;;  %v634_v10 = vadd.f32 %v1137_v51, %v633_v9 }
 0x1e9   :  { %736 = vst [vmem:[%s1272_s5 + $0x58] sm:$0xff] %v642_v8 }
 0x1ea   :  { %734 = vst [vmem:[%s1272_s5 + $0x48] sm:$0xff] %v634_v10 }
 0x1ec   :  { %v921_v11 = vpop.f32.mrb[12].mxu1 }
 0x1ed   :  { %v655_v12 = vadd.f32 %v921_v11, %v1137_v51  ;;  %v646_v13 = vpop.f32.mrb[13].mxu1 }
 0x1ee   :  { %v647_v14 = vadd.f32 %v1137_v51, %v646_v13  ;;  %v922_v15 = vpop.f32.mrb[14].mxu1 }
 0x1ef   :  { %739 = vst [vmem:[%s1272_s5 + $0x70] sm:$0xff] %v655_v12  ;;  %v658_v16 = vadd.f32 %v922_v15, %v1137_v51  ;;  %v649_v17 = vpop.f32.mrb[15].mxu1 }
 0x1f0   :  { %737 = vst [vmem:[%s1272_s5 + $0x60] sm:$0xff] %v647_v14  ;;  %v650_v18 = vadd.f32 %v1137_v51, %v649_v17 }
 0x1f1   :  { %740 = vst [vmem:[%s1272_s5 + $0x78] sm:$0xff] %v658_v16 }
 0x1f2   :  { %738 = vst [vmem:[%s1272_s5 + $0x68] sm:$0xff] %v650_v18 }
 0x1f4   :  { %v925_v19 = vpop.f32.mrb[16].mxu1 }
 0x1f5   :  { %v671_v20 = vadd.f32 %v925_v19, %v1137_v51  ;;  %v662_v21 = vpop.f32.mrb[17].mxu1 }
 0x1f6   :  { %v663_v22 = vadd.f32 %v1137_v51, %v662_v21  ;;  %v926_v23 = vpop.f32.mrb[18].mxu1 }
 0x1f7   :  { %743 = vst [vmem:[%s1272_s5 + $0x90] sm:$0xff] %v671_v20  ;;  %v674_v24 = vadd.f32 %v926_v23, %v1137_v51  ;;  %v665_v25 = vpop.f32.mrb[19].mxu1 }
 0x1f8   :  { %741 = vst [vmem:[%s1272_s5 + $0x80] sm:$0xff] %v663_v22  ;;  %v666_v26 = vadd.f32 %v1137_v51, %v665_v25 }
 0x1f9   :  { %744 = vst [vmem:[%s1272_s5 + $0x98] sm:$0xff] %v674_v24 }
 0x1fa   :  { %742 = vst [vmem:[%s1272_s5 + $0x88] sm:$0xff] %v666_v26 }
 0x1fc   :  { %v929_v27 = vpop.f32.mrb[20].mxu1 }
 0x1fd   :  { %v687_v28 = vadd.f32 %v929_v27, %v1137_v51  ;;  %v678_v29 = vpop.f32.mrb[21].mxu1 }
 0x1fe   :  { %v679_v30 = vadd.f32 %v1137_v51, %v678_v29  ;;  %v930_v31 = vpop.f32.mrb[22].mxu1 }
 0x1ff   :  { %747 = vst [vmem:[%s1272_s5 + $0xb0] sm:$0xff] %v687_v28  ;;  %v690_v33 = vadd.f32 %v930_v31, %v1137_v51  ;;  %v681_v34 = vpop.f32.mrb[23].mxu1 }
 0x200   :  { %745 = vst [vmem:[%s1272_s5 + $0xa0] sm:$0xff] %v679_v30  ;;  %v682_v35 = vadd.f32 %v1137_v51, %v681_v34 }
 0x201   :  { %748 = vst [vmem:[%s1272_s5 + $0xb8] sm:$0xff] %v690_v33 }
 0x202   :  { %746 = vst [vmem:[%s1272_s5 + $0xa8] sm:$0xff] %v682_v35 }
 0x204   :  { %v933_v36 = vpop.f32.mrb[24].mxu1 }
 0x205   :  { %v703_v37 = vadd.f32 %v933_v36, %v1137_v51  ;;  %v694_v38 = vpop.f32.mrb[25].mxu1 }
 0x206   :  { %v695_v39 = vadd.f32 %v1137_v51, %v694_v38  ;;  %v934_v40 = vpop.f32.mrb[26].mxu1 }
 0x207   :  { %751 = vst [vmem:[%s1272_s5 + $0xd0] sm:$0xff] %v703_v37  ;;  %v706_v41 = vadd.f32 %v934_v40, %v1137_v51  ;;  %v697_v42 = vpop.f32.mrb[27].mxu1 }
 0x208   :  { %749 = vst [vmem:[%s1272_s5 + $0xc0] sm:$0xff] %v695_v39  ;;  %v698_v43 = vadd.f32 %v1137_v51, %v697_v42 }
 0x209   :  { %752 = vst [vmem:[%s1272_s5 + $0xd8] sm:$0xff] %v706_v41 }
 0x20a   :  { %750 = vst [vmem:[%s1272_s5 + $0xc8] sm:$0xff] %v698_v43 }
 0x20c   :  { %v937_v44 = vpop.f32.mrb[28].mxu1 }
 0x20d   :  { %v719_v45 = vadd.f32 %v937_v44, %v1137_v51  ;;  %v710_v46 = vpop.f32.mrb[29].mxu1 }
 0x20e   :  { %v711_v47 = vadd.f32 %v1137_v51, %v710_v46  ;;  %v938_v48 = vpop.f32.mrb[30].mxu1 }
 0x20f   :  { %755 = vst [vmem:[%s1272_s5 + $0xf0] sm:$0xff] %v719_v45  ;;  %v722_v49 = vadd.f32 %v938_v48, %v1137_v51  ;;  %v713_v50 = vpop.f32.mrb[31].mxu1 }
 0x210   :  { %753 = vst [vmem:[%s1272_s5 + $0xe0] sm:$0xff] %v711_v47  ;;  %v714_v32 = vadd.f32 %v1137_v51, %v713_v50 }
 0x211   :  { %756 = vst [vmem:[%s1272_s5 + $0xf8] sm:$0xff] %v722_v49 }
 0x212   :  { %754 = vst [vmem:[%s1272_s5 + $0xe8] sm:$0xff] %v714_v32 }

</bundles_post_ra>
